<compile_context>
chip_gen: v7x
topology: tpu7x:2x2x1
jax: 0.10.0
libtpu: 0.0.40
codegen_flags: <defaults>
</compile_context>

<pallas_src>
import functools

import jax
import jax.numpy as jnp
from jax.experimental import pallas as pl
from jax.experimental.pallas import tpu as pltpu


def _round_up(v, m):
    return ((v + m - 1) // m) * m


def _silu_f32(z):
    # z * sigmoid(z); the divide goes to the EUP via the approx reciprocal.
    return z * pl.reciprocal(1.0 + jnp.exp(-z), approx=True)


# ------------------- pass 1: cv1 + stacked K/E/V/Q projections ---------------
def _proj_kernel(x_ref, w1_ref, b1_ref, wkevq_ref, bkevq_ref, o_ref):
    """Per (batch, pixel-block): x1 = SiLU(cv1(x)); [K;E;V;Q] = Wkevq @ x1."""
    f32 = jnp.float32
    bf16 = jnp.bfloat16
    x = x_ref[0]                                                      # [Cp, TP]
    x1 = _silu_f32(jnp.dot(w1_ref[...], x.astype(bf16),
                           preferred_element_type=f32) + b1_ref[...])  # [C2p, TP]
    kevq = jnp.dot(wkevq_ref[...], x1.astype(bf16),
                   preferred_element_type=f32) + bkevq_ref[...]       # [4*C2p, TP]
    o_ref[0] = kevq.astype(o_ref.dtype)                               # bf16 store


# ------------------- pass 2: attention + cv2 (+ shortcut) --------------------
def _attn_kernel(kev_ref, q_ref, pos_ref, xres_ref, w2_ref, b2_ref, o_ref,
                 *, C2p, add_residual):
    f32 = jnp.float32
    bf16 = jnp.bfloat16

    kev = kev_ref[0]                       # [3*C2p, HW] bf16 : [K ; E ; V]
    k = kev[:C2p, :]
    e = kev[C2p:2 * C2p, :]
    v = kev[2 * C2p:, :]
    q = q_ref[0]                           # [C2p, TQ] bf16
    pos = pos_ref[...]                     # [C2p, TQ] bf16

    # energy[i, j] = q[:, i].k[:, j] + pos[:, i].e[:, j]   -> [TQ, HW], f32 acc
    tn0 = (((0,), (0,)), ((), ()))
    energy = (jax.lax.dot_general(q, k, tn0, preferred_element_type=f32)
              + jax.lax.dot_general(pos, e, tn0, preferred_element_type=f32))

    # softmax over keys (f32), EUP reciprocal for the normalization
    m = jnp.max(energy, axis=-1, keepdims=True)
    p = jnp.exp(energy - m)
    attn = p * pl.reciprocal(jnp.sum(p, axis=-1, keepdims=True), approx=True)

    # out[c, i] = sum_j v[c, j] * attn[i, j]   (channel-major -> lane-dense)
    tn1 = (((1,), (1,)), ((), ()))
    out_cm = jax.lax.dot_general(v, attn.astype(bf16), tn1,
                                 preferred_element_type=f32)          # [C2p, TQ]

    # cv2 (BN folded) + SiLU (+ shortcut)
    y = _silu_f32(jnp.dot(w2_ref[...], out_cm.astype(bf16),
                          preferred_element_type=f32) + b2_ref[...])  # [Cp, TQ]
    if add_residual:
        y = y + xres_ref[0].astype(f32)
    o_ref[0] = y.astype(o_ref.dtype)


@functools.partial(jax.jit, static_argnames=("shortcut", "eps", "tq", "tp"))
def extra_position_prompt_sa_bottleneck(x, p, *, shortcut=True, eps=1e-5,
                                        tq=128, tp=512):
    """Forward pass of ExtraPositionPromptSABottleneck (eval-mode BN)."""
    N, C, H, W = x.shape
    C2 = C // 2
    HW = H * W
    Cp = _round_up(C, 8)       # f32 sublane multiple
    C2p = _round_up(C2, 16)    # bf16 sublane multiple (sub-32-bit packing)
    f32 = jnp.float32
    bf16 = jnp.bfloat16

    # Tile sizes: multiples of 128 lanes, or the full pixel dim if smaller.
    # (On v6e, tq=256 can be profitable for large HW; v5e keep 128.)
    TP = tp if HW > tp else HW
    TQ = tq if HW > tq else HW

    def pad2(a, r, c):
        a = a.astype(f32)
        return jnp.pad(a, ((0, r - a.shape[0]), (0, c - a.shape[1])))

    # ---- fold eval-mode BatchNorm into cv1/cv2; stack K/E/V/Q weights ------
    s1 = p["bn1_gamma"] / jnp.sqrt(p["bn1_var"] + eps)
    w1 = pad2(s1[:, None] * p["cv1_w"][:, :, 0, 0], C2p, Cp).astype(bf16)
    b1 = pad2((p["bn1_beta"] - p["bn1_mean"] * s1)[:, None], C2p, 1)
    s2 = p["bn2_gamma"] / jnp.sqrt(p["bn2_var"] + eps)
    w2 = pad2(s2[:, None] * p["cv2_w"][:, :, 0, 0], Cp, C2p).astype(bf16)
    b2 = pad2((p["bn2_beta"] - p["bn2_mean"] * s2)[:, None], Cp, 1)

    wkevq = jnp.concatenate(
        [pad2(p["k_w"][:, :, 0, 0], C2p, C2p),
         pad2(p["e_w"][:, :, 0, 0], C2p, C2p),
         pad2(p["v_w"][:, :, 0, 0], C2p, C2p),
         pad2(p["q_w"][:, :, 0, 0], C2p, C2p)], axis=0).astype(bf16)   # [4*C2p, C2p]
    bkevq = jnp.concatenate(
        [pad2(p["k_b"][:, None], C2p, 1),
         pad2(p["e_b"][:, None], C2p, 1),
         pad2(p["v_b"][:, None], C2p, 1),
         pad2(p["q_b"][:, None], C2p, 1)], axis=0)                     # [4*C2p, 1]

    # Positional prompt stays channel-major (no transpose / HBM round-trip).
    pos = pad2((p["rel_h"] + p["rel_w"]).reshape(C2, HW), C2p, HW).astype(bf16)

    # Activations in native flattened-NCHW layout (lanes = pixels, lane-dense),
    # channels zero-padded to a sublane multiple.
    x_cm = jnp.pad(x.reshape(N, C, HW), ((0, 0), (0, Cp - C), (0, 0)))

    # ---- pass 1: full-image projections, computed ONCE per image ------------
    kevq = pl.pallas_call(
        _proj_kernel,
        out_shape=jax.ShapeDtypeStruct((N, 4 * C2p, HW), bf16),
        grid=(N, pl.cdiv(HW, TP)),
        in_specs=[
            pl.BlockSpec((1, Cp, TP), lambda n, t: (n, 0, t)),   # x pixel block
            pl.BlockSpec((C2p, Cp), lambda n, t: (0, 0)),        # cv1 weight (BN folded)
            pl.BlockSpec((C2p, 1), lambda n, t: (0, 0)),         # cv1 shift
            pl.BlockSpec((4 * C2p, C2p), lambda n, t: (0, 0)),   # [Wk;We;Wv;Wq]
            pl.BlockSpec((4 * C2p, 1), lambda n, t: (0, 0)),     # [bk;be;bv;bq]
        ],
        out_specs=pl.BlockSpec((1, 4 * C2p, TP), lambda n, t: (n, 0, t)),
        compiler_params=pltpu.CompilerParams(
            dimension_semantics=("parallel", "parallel")),
    )(x_cm, w1, b1, wkevq, bkevq)

    # ---- pass 2: attention over all keys for each query block ---------------
    kernel = functools.partial(_attn_kernel, C2p=C2p,
                               add_residual=bool(shortcut))
    out = pl.pallas_call(
        kernel,
        out_shape=jax.ShapeDtypeStruct((N, Cp, HW), x.dtype),
        grid=(N, pl.cdiv(HW, TQ)),
        in_specs=[
            # K;E;V for the whole image: index depends only on n, so the block
            # stays resident across all q iterations (no re-DMA per q block).
            pl.BlockSpec((1, 3 * C2p, HW), lambda n, q: (n, 0, 0)),
            # Q for this query block only (channel block 3 of the stacked out).
            pl.BlockSpec((1, C2p, TQ), lambda n, q: (n, 3, q)),
            pl.BlockSpec((C2p, TQ), lambda n, q: (0, q)),        # positional prompt
            pl.BlockSpec((1, Cp, TQ), lambda n, q: (n, 0, q)),   # residual slice of x
            pl.BlockSpec((Cp, C2p), lambda n, q: (0, 0)),        # cv2 weight (BN folded)
            pl.BlockSpec((Cp, 1), lambda n, q: (0, 0)),          # cv2 shift
        ],
        out_specs=pl.BlockSpec((1, Cp, TQ), lambda n, q: (n, 0, q)),
        compiler_params=pltpu.CompilerParams(
            dimension_semantics=("parallel", "parallel"),
            vmem_limit_bytes=64 * 1024 * 1024),
    )(kevq, kevq, pos, x_cm, w2, b2)

    return out[:, :C, :].reshape(N, C, H, W)


# ----------------------------- pure-JAX reference -----------------------------
def _silu(z):
    return z * jax.nn.sigmoid(z)


def _conv_bn_silu_ref(x, w, gamma, beta, mean, var, eps):
    hp = jax.lax.Precision.HIGHEST
    y = jnp.einsum("nchw,oc->nohw", x, w[:, :, 0, 0], precision=hp)
    scale = gamma / jnp.sqrt(var + eps)
    shift = beta - mean * scale
    y = y * scale[None, :, None, None] + shift[None, :, None, None]
    return _silu(y)


def _reference(x, p, *, shortcut=True, eps=1e-5):
    hp = jax.lax.Precision.HIGHEST
    N, C, H, W = x.shape
    C2 = C // 2
    x1 = _conv_bn_silu_ref(x, p["cv1_w"], p["bn1_gamma"], p["bn1_beta"],
                           p["bn1_mean"], p["bn1_var"], eps)

    def conv1x1(inp, w, b):
        return (jnp.einsum("nchw,oc->nohw", inp, w[:, :, 0, 0], precision=hp)
                + b[None, :, None, None])

    q = conv1x1(x1, p["q_w"], p["q_b"]).reshape(N, C2, H * W)
    k = conv1x1(x1, p["k_w"], p["k_b"]).reshape(N, C2, H * W)
    v = conv1x1(x1, p["v_w"], p["v_b"]).reshape(N, C2, H * W)
    e = conv1x1(x1, p["e_w"], p["e_b"]).reshape(N, C2, H * W)
    cc = jnp.einsum("nci,ncj->nij", q, k, precision=hp)
    pos = (p["rel_h"] + p["rel_w"]).reshape(C2, H * W)
    cp_ = jnp.einsum("ci,ncj->nij", pos, e, precision=hp)
    attn = jax.nn.softmax(cc + cp_, axis=-1)
    out = jnp.einsum("ncj,nij->nci", v, attn, precision=hp).reshape(N, C2, H, W)
    y = _conv_bn_silu_ref(out, p["cv2_w"], p["bn2_gamma"], p["bn2_beta"],
                          p["bn2_mean"], p["bn2_var"], eps)
    return x + y if shortcut else y


if __name__ == "__main__":
    key = jax.random.PRNGKey(0)
    n_dims, size, batch = 4, 16, 2
    C, C2, H, W = n_dims, n_dims // 2, size, size

    ks = iter(jax.random.split(key, 32))

    def nrm(shape, s=1.0):
        return s * jax.random.normal(next(ks), shape, jnp.float32)

    x = nrm((batch, C, H, W))
    params = {
        "cv1_w": nrm((C2, C, 1, 1), 0.3),
        "bn1_gamma": 1.0 + nrm((C2,), 0.1),
        "bn1_beta": nrm((C2,), 0.1),
        "bn1_mean": nrm((C2,), 0.1),
        "bn1_var": jax.random.uniform(next(ks), (C2,), jnp.float32, 0.5, 1.5),
        "q_w": nrm((C2, C2, 1, 1), 0.3), "q_b": nrm((C2,), 0.1),
        "k_w": nrm((C2, C2, 1, 1), 0.3), "k_b": nrm((C2,), 0.1),
        "v_w": nrm((C2, C2, 1, 1), 0.3), "v_b": nrm((C2,), 0.1),
        "e_w": nrm((C2, C2, 1, 1), 0.3), "e_b": nrm((C2,), 0.1),
        "rel_h": nrm((1, C2, H, 1)),
        "rel_w": nrm((1, C2, 1, W)),
        "cv2_w": nrm((C, C2, 1, 1), 0.3),
        "bn2_gamma": 1.0 + nrm((C,), 0.1),
        "bn2_beta": nrm((C,), 0.1),
        "bn2_mean": nrm((C,), 0.1),
        "bn2_var": jax.random.uniform(next(ks), (C,), jnp.float32, 0.5, 1.5),
    }

    out = extra_position_prompt_sa_bottleneck(x, params, shortcut=True)
    out = jax.block_until_ready(out)

    ref = _reference(x, params, shortcut=True)
    assert out.shape == (batch, C, H, W)
    max_err = jnp.max(jnp.abs(out - ref))
    # tolerance accounts for bf16 MXU operands (f32 accumulation) + approx
    # EUP reciprocal; reference is all-f32 HIGHEST precision.
    assert jnp.allclose(out, ref, atol=2e-2, rtol=2e-2), f"max abs err {max_err}"

    print("KERNEL_OK")
</pallas_src>

<mosaic_0001>
module attributes {stable_mosaic.version = 11 : i64} {
  func.func @_proj_kernel(%arg0: i32, %arg1: i32, %arg2: memref<1x8x256xf32, #tpu.memory_space<vmem>>, %arg3: memref<16x8xbf16, #tpu.memory_space<vmem>>, %arg4: memref<16x1xf32, #tpu.memory_space<vmem>>, %arg5: memref<64x16xbf16, #tpu.memory_space<vmem>>, %arg6: memref<64x1xf32, #tpu.memory_space<vmem>>, %arg7: memref<1x64x256xbf16, #tpu.memory_space<vmem>>) attributes {dimension_semantics = [#tpu.dimension_semantics<parallel>, #tpu.dimension_semantics<parallel>], iteration_bounds = array<i64: 2, 1>, scalar_prefetch = 0 : i64, scratch_operands = 0 : i64, tpu.core_type = #tpu.core_type<tc>, window_params = [{transform_indices = @transform_0, window_bounds = array<i64: 1, 8, 256>}, {pipeline_mode = #tpu.pipeline_mode<synchronous>, transform_indices = @transform_1, window_bounds = array<i64: 16, 8>}, {pipeline_mode = #tpu.pipeline_mode<synchronous>, transform_indices = @transform_2, window_bounds = array<i64: 16, 1>}, {pipeline_mode = #tpu.pipeline_mode<synchronous>, transform_indices = @transform_3, window_bounds = array<i64: 64, 16>}, {pipeline_mode = #tpu.pipeline_mode<synchronous>, transform_indices = @transform_4, window_bounds = array<i64: 64, 1>}, {transform_indices = @transform_5, window_bounds = array<i64: 1, 64, 256>}]} {
    %c0 = arith.constant 0 : index
    %c0_0 = arith.constant 0 : index
    %c0_1 = arith.constant 0 : index
    %0 = vector.load %arg2[%c0, %c0_0, %c0_1] : memref<1x8x256xf32, #tpu.memory_space<vmem>>, vector<1x8x256xf32>
    %1 = vector.shape_cast %0 : vector<1x8x256xf32> to vector<8x256xf32>
    %c0_2 = arith.constant 0 : index
    %c0_3 = arith.constant 0 : index
    %2 = vector.load %arg3[%c0_2, %c0_3] : memref<16x8xbf16, #tpu.memory_space<vmem>>, vector<16x8xbf16>
    %3 = arith.truncf %1 : vector<8x256xf32> to vector<8x256xbf16>
    %cst = arith.constant dense<0.000000e+00> : vector<16x256xf32>
    %4 = tpu.matmul %2, %3, %cst {dimension_numbers = #tpu.dot_dimension_numbers<[1], [0], [0], [1], [0, 0, 1, 1], [], []>} : vector<16x8xbf16>, vector<8x256xbf16>, vector<16x256xf32> -> vector<16x256xf32>
    %c0_4 = arith.constant 0 : index
    %c0_5 = arith.constant 0 : index
    %5 = vector.load %arg4[%c0_4, %c0_5] : memref<16x1xf32, #tpu.memory_space<vmem>>, vector<16x1xf32>
    %6 = vector.broadcast %5 : vector<16x1xf32> to vector<16x256xf32>
    %7 = arith.addf %4, %6 : vector<16x256xf32>
    %cst_6 = arith.constant 0.000000e+00 : f32
    %8 = vector.broadcast %cst_6 : f32 to vector<16x256xf32>
    %9 = arith.subf %8, %7 : vector<16x256xf32>
    %10 = math.exp %9 : vector<16x256xf32>
    %cst_7 = arith.constant 1.000000e+00 : f32
    %11 = vector.broadcast %cst_7 : f32 to vector<16x256xf32>
    %12 = arith.addf %11, %10 : vector<16x256xf32>
    %13 = tpu.reciprocal %12 {approx = true} : vector<16x256xf32> -> vector<16x256xf32>
    %14 = arith.mulf %7, %13 : vector<16x256xf32>
    %c0_8 = arith.constant 0 : index
    %c0_9 = arith.constant 0 : index
    %15 = vector.load %arg5[%c0_8, %c0_9] : memref<64x16xbf16, #tpu.memory_space<vmem>>, vector<64x16xbf16>
    %16 = arith.truncf %14 : vector<16x256xf32> to vector<16x256xbf16>
    %cst_10 = arith.constant dense<0.000000e+00> : vector<64x256xf32>
    %17 = tpu.matmul %15, %16, %cst_10 {dimension_numbers = #tpu.dot_dimension_numbers<[1], [0], [0], [1], [0, 0, 1, 1], [], []>} : vector<64x16xbf16>, vector<16x256xbf16>, vector<64x256xf32> -> vector<64x256xf32>
    %c0_11 = arith.constant 0 : index
    %c0_12 = arith.constant 0 : index
    %18 = vector.load %arg6[%c0_11, %c0_12] : memref<64x1xf32, #tpu.memory_space<vmem>>, vector<64x1xf32>
    %19 = vector.broadcast %18 : vector<64x1xf32> to vector<64x256xf32>
    %20 = arith.addf %17, %19 : vector<64x256xf32>
    %21 = arith.truncf %20 : vector<64x256xf32> to vector<64x256xbf16>
    %c0_13 = arith.constant 0 : index
    %c0_14 = arith.constant 0 : index
    %c0_15 = arith.constant 0 : index
    %22 = vector.load %arg7[%c0_13, %c0_14, %c0_15] : memref<1x64x256xbf16, #tpu.memory_space<vmem>>, vector<1x64x256xbf16>
    %23 = vector.shape_cast %22 : vector<1x64x256xbf16> to vector<64x256xbf16>
    %24 = vector.shape_cast %21 : vector<64x256xbf16> to vector<1x64x256xbf16>
    tpu.vector_store %arg7[%c0_13, %c0_14, %c0_15], %24 {strides = array<i32>} : memref<1x64x256xbf16, #tpu.memory_space<vmem>>, vector<1x64x256xbf16>,
    return
  }
  func.func @transform_0(%arg0: i32, %arg1: i32) -> (i32, i32, i32) {
    %c0_i32 = arith.constant 0 : i32
    %c0_i32_0 = arith.constant 0 : i32
    return %arg0, %c0_i32, %arg1 : i32, i32, i32
  }
  func.func @transform_1(%arg0: i32, %arg1: i32) -> (i32, i32) {
    %c0_i32 = arith.constant 0 : i32
    %c0_i32_0 = arith.constant 0 : i32
    %c0_i32_1 = arith.constant 0 : i32
    return %c0_i32, %c0_i32_0 : i32, i32
  }
  func.func @transform_2(%arg0: i32, %arg1: i32) -> (i32, i32) {
    %c0_i32 = arith.constant 0 : i32
    %c0_i32_0 = arith.constant 0 : i32
    %c0_i32_1 = arith.constant 0 : i32
    return %c0_i32, %c0_i32_0 : i32, i32
  }
  func.func @transform_3(%arg0: i32, %arg1: i32) -> (i32, i32) {
    %c0_i32 = arith.constant 0 : i32
    %c0_i32_0 = arith.constant 0 : i32
    %c0_i32_1 = arith.constant 0 : i32
    return %c0_i32, %c0_i32_0 : i32, i32
  }
  func.func @transform_4(%arg0: i32, %arg1: i32) -> (i32, i32) {
    %c0_i32 = arith.constant 0 : i32
    %c0_i32_0 = arith.constant 0 : i32
    %c0_i32_1 = arith.constant 0 : i32
    return %c0_i32, %c0_i32_0 : i32, i32
  }
  func.func @transform_5(%arg0: i32, %arg1: i32) -> (i32, i32, i32) {
    %c0_i32 = arith.constant 0 : i32
    %c0_i32_0 = arith.constant 0 : i32
    return %arg0, %c0_i32, %arg1 : i32, i32, i32
  }
}

module attributes {stable_mosaic.version = 11 : i64} {
  func.func @_attn_kernel(%arg0: i32, %arg1: i32, %arg2: memref<1x48x256xbf16, #tpu.memory_space<vmem>>, %arg3: memref<1x16x128xbf16, #tpu.memory_space<vmem>>, %arg4: memref<16x128xbf16, #tpu.memory_space<vmem>>, %arg5: memref<1x8x128xf32, #tpu.memory_space<vmem>>, %arg6: memref<8x16xbf16, #tpu.memory_space<vmem>>, %arg7: memref<8x1xf32, #tpu.memory_space<vmem>>, %arg8: memref<1x8x128xf32, #tpu.memory_space<vmem>>) attributes {dimension_semantics = [#tpu.dimension_semantics<parallel>, #tpu.dimension_semantics<parallel>], iteration_bounds = array<i64: 2, 2>, scalar_prefetch = 0 : i64, scratch_operands = 0 : i64, tpu.core_type = #tpu.core_type<tc>, window_params = [{transform_indices = @transform_0, window_bounds = array<i64: 1, 48, 256>}, {transform_indices = @transform_1, window_bounds = array<i64: 1, 16, 128>}, {transform_indices = @transform_2, window_bounds = array<i64: 16, 128>}, {transform_indices = @transform_3, window_bounds = array<i64: 1, 8, 128>}, {pipeline_mode = #tpu.pipeline_mode<synchronous>, transform_indices = @transform_4, window_bounds = array<i64: 8, 16>}, {pipeline_mode = #tpu.pipeline_mode<synchronous>, transform_indices = @transform_5, window_bounds = array<i64: 8, 1>}, {transform_indices = @transform_6, window_bounds = array<i64: 1, 8, 128>}]} {
    %c0 = arith.constant 0 : index
    %c0_0 = arith.constant 0 : index
    %c0_1 = arith.constant 0 : index
    %0 = vector.load %arg2[%c0, %c0_0, %c0_1] : memref<1x48x256xbf16, #tpu.memory_space<vmem>>, vector<1x48x256xbf16>
    %1 = vector.shape_cast %0 : vector<1x48x256xbf16> to vector<48x256xbf16>
    %2 = vector.extract_strided_slice %1 {offsets = [0, 0], sizes = [16, 256], strides = [1, 1]} : vector<48x256xbf16> to vector<16x256xbf16>
    %3 = vector.extract_strided_slice %1 {offsets = [16, 0], sizes = [16, 256], strides = [1, 1]} : vector<48x256xbf16> to vector<16x256xbf16>
    %4 = vector.extract_strided_slice %1 {offsets = [32, 0], sizes = [16, 256], strides = [1, 1]} : vector<48x256xbf16> to vector<16x256xbf16>
    %c0_2 = arith.constant 0 : index
    %c0_3 = arith.constant 0 : index
    %c0_4 = arith.constant 0 : index
    %5 = vector.load %arg3[%c0_2, %c0_3, %c0_4] : memref<1x16x128xbf16, #tpu.memory_space<vmem>>, vector<1x16x128xbf16>
    %6 = vector.shape_cast %5 : vector<1x16x128xbf16> to vector<16x128xbf16>
    %c0_5 = arith.constant 0 : index
    %c0_6 = arith.constant 0 : index
    %7 = vector.load %arg4[%c0_5, %c0_6] : memref<16x128xbf16, #tpu.memory_space<vmem>>, vector<16x128xbf16>
    %cst = arith.constant dense<0.000000e+00> : vector<128x256xf32>
    %8 = tpu.matmul %6, %2, %cst {dimension_numbers = #tpu.dot_dimension_numbers<[0], [0], [1], [1], [0, 1, 1, 1], [], []>} : vector<16x128xbf16>, vector<16x256xbf16>, vector<128x256xf32> -> vector<128x256xf32>
    %cst_7 = arith.constant dense<0.000000e+00> : vector<128x256xf32>
    %9 = tpu.matmul %7, %3, %cst_7 {dimension_numbers = #tpu.dot_dimension_numbers<[0], [0], [1], [1], [0, 1, 1, 1], [], []>} : vector<16x128xbf16>, vector<16x256xbf16>, vector<128x256xf32> -> vector<128x256xf32>
    %10 = arith.addf %8, %9 : vector<128x256xf32>
    %cst_8 = arith.constant dense<0xFF800000> : vector<128xf32>
    %11 = vector.multi_reduction <maximumf>, %10, %cst_8 [1] : vector<128x256xf32> to vector<128xf32>
    %12 = vector.shape_cast %11 : vector<128xf32> to vector<128x1xf32>
    %13 = vector.broadcast %12 : vector<128x1xf32> to vector<128x256xf32>
    %14 = arith.subf %10, %13 : vector<128x256xf32>
    %15 = math.exp %14 : vector<128x256xf32>
    %cst_9 = arith.constant dense<0.000000e+00> : vector<128xf32>
    %16 = vector.multi_reduction <add>, %15, %cst_9 [1] : vector<128x256xf32> to vector<128xf32>
    %17 = vector.shape_cast %16 : vector<128xf32> to vector<128x1xf32>
    %18 = tpu.reciprocal %17 {approx = true} : vector<128x1xf32> -> vector<128x1xf32>
    %19 = vector.broadcast %18 : vector<128x1xf32> to vector<128x256xf32>
    %20 = arith.mulf %15, %19 : vector<128x256xf32>
    %21 = arith.truncf %20 : vector<128x256xf32> to vector<128x256xbf16>
    %cst_10 = arith.constant dense<0.000000e+00> : vector<16x128xf32>
    %22 = tpu.matmul %4, %21, %cst_10 {dimension_numbers = #tpu.dot_dimension_numbers<[1], [1], [0], [0], [0, 0, 1, 0], [], []>} : vector<16x256xbf16>, vector<128x256xbf16>, vector<16x128xf32> -> vector<16x128xf32>
    %c0_11 = arith.constant 0 : index
    %c0_12 = arith.constant 0 : index
    %23 = vector.load %arg6[%c0_11, %c0_12] : memref<8x16xbf16, #tpu.memory_space<vmem>>, vector<8x16xbf16>
    %24 = arith.truncf %22 : vector<16x128xf32> to vector<16x128xbf16>
    %cst_13 = arith.constant dense<0.000000e+00> : vector<8x128xf32>
    %25 = tpu.matmul %23, %24, %cst_13 {dimension_numbers = #tpu.dot_dimension_numbers<[1], [0], [0], [1], [0, 0, 1, 1], [], []>} : vector<8x16xbf16>, vector<16x128xbf16>, vector<8x128xf32> -> vector<8x128xf32>
    %c0_14 = arith.constant 0 : index
    %c0_15 = arith.constant 0 : index
    %26 = vector.load %arg7[%c0_14, %c0_15] : memref<8x1xf32, #tpu.memory_space<vmem>>, vector<8x1xf32>
    %27 = vector.broadcast %26 : vector<8x1xf32> to vector<8x128xf32>
    %28 = arith.addf %25, %27 : vector<8x128xf32>
    %cst_16 = arith.constant 0.000000e+00 : f32
    %29 = vector.broadcast %cst_16 : f32 to vector<8x128xf32>
    %30 = arith.subf %29, %28 : vector<8x128xf32>
    %31 = math.exp %30 : vector<8x128xf32>
    %cst_17 = arith.constant 1.000000e+00 : f32
    %32 = vector.broadcast %cst_17 : f32 to vector<8x128xf32>
    %33 = arith.addf %32, %31 : vector<8x128xf32>
    %34 = tpu.reciprocal %33 {approx = true} : vector<8x128xf32> -> vector<8x128xf32>
    %35 = arith.mulf %28, %34 : vector<8x128xf32>
    %c0_18 = arith.constant 0 : index
    %c0_19 = arith.constant 0 : index
    %c0_20 = arith.constant 0 : index
    %36 = vector.load %arg5[%c0_18, %c0_19, %c0_20] : memref<1x8x128xf32, #tpu.memory_space<vmem>>, vector<1x8x128xf32>
    %37 = vector.shape_cast %36 : vector<1x8x128xf32> to vector<8x128xf32>
    %38 = arith.addf %35, %37 : vector<8x128xf32>
    %c0_21 = arith.constant 0 : index
    %c0_22 = arith.constant 0 : index
    %c0_23 = arith.constant 0 : index
    %39 = vector.load %arg8[%c0_21, %c0_22, %c0_23] : memref<1x8x128xf32, #tpu.memory_space<vmem>>, vector<1x8x128xf32>
    %40 = vector.shape_cast %39 : vector<1x8x128xf32> to vector<8x128xf32>
    %41 = vector.shape_cast %38 : vector<8x128xf32> to vector<1x8x128xf32>
    tpu.vector_store %arg8[%c0_21, %c0_22, %c0_23], %41 {strides = array<i32>} : memref<1x8x128xf32, #tpu.memory_space<vmem>>, vector<1x8x128xf32>,
    return
  }
  func.func @transform_0(%arg0: i32, %arg1: i32) -> (i32, i32, i32) {
    %c0_i32 = arith.constant 0 : i32
    %c0_i32_0 = arith.constant 0 : i32
    %c0_i32_1 = arith.constant 0 : i32
    return %arg0, %c0_i32, %c0_i32_0 : i32, i32, i32
  }
  func.func @transform_1(%arg0: i32, %arg1: i32) -> (i32, i32, i32) {
    %c3_i32 = arith.constant 3 : i32
    %c0_i32 = arith.constant 0 : i32
    return %arg0, %c3_i32, %arg1 : i32, i32, i32
  }
  func.func @transform_2(%arg0: i32, %arg1: i32) -> (i32, i32) {
    %c0_i32 = arith.constant 0 : i32
    %c0_i32_0 = arith.constant 0 : i32
    return %c0_i32, %arg1 : i32, i32
  }
  func.func @transform_3(%arg0: i32, %arg1: i32) -> (i32, i32, i32) {
    %c0_i32 = arith.constant 0 : i32
    %c0_i32_0 = arith.constant 0 : i32
    return %arg0, %c0_i32, %arg1 : i32, i32, i32
  }
  func.func @transform_4(%arg0: i32, %arg1: i32) -> (i32, i32) {
    %c0_i32 = arith.constant 0 : i32
    %c0_i32_0 = arith.constant 0 : i32
    %c0_i32_1 = arith.constant 0 : i32
    return %c0_i32, %c0_i32_0 : i32, i32
  }
  func.func @transform_5(%arg0: i32, %arg1: i32) -> (i32, i32) {
    %c0_i32 = arith.constant 0 : i32
    %c0_i32_0 = arith.constant 0 : i32
    %c0_i32_1 = arith.constant 0 : i32
    return %c0_i32, %c0_i32_0 : i32, i32
  }
  func.func @transform_6(%arg0: i32, %arg1: i32) -> (i32, i32, i32) {
    %c0_i32 = arith.constant 0 : i32
    %c0_i32_0 = arith.constant 0 : i32
    return %arg0, %c0_i32, %arg1 : i32, i32, i32
  }
}

</mosaic_0001>

<bundles_post_ra>
// kernel: extra_position_prompt_sa_bottleneck.2
= control target key start
LH: loop header
LB: loop body
LE: loop exit
PB: predicated region body
PF: predicated region fallthrough
CT: control target
= control target key end

     0   :  { %10 = vsyncpa [#allocation3], 0  ;;  %s1092_s0 = inlined_call_operand.vmem [shape: f32[2,8,256], index: 0, kind: input, shape index: {}]   ;;  %s1093_s1 = inlined_call_operand.vmem [shape: bf16[16,8], index: 1, kind: input, shape index: {}]   ;;  %s1094_s2 = inlined_call_operand.vmem [shape: f32[16,1], index: 2, kind: input, shape index: {}]   ;;  %s1095_s3 = inlined_call_operand.vmem [shape: bf16[64,16], index: 3, kind: input, shape index: {}]   ;;  %s1096_s4 = inlined_call_operand.vmem [shape: f32[64,1], index: 4, kind: input, shape index: {}]   ;;  %s1097_s5 = inlined_call_operand.hbm [shape: bf16[2,64,256], index: 5, kind: output, shape index: {}]  }
   0x1   :  { %12 = vsyncpa [#allocation3 + $0x1], 0  ;;  %s910_s18 = smov 0   ;;  %s912_s19 = smov 0  }
   0x2   :  { %s914_s20 = smov 0   ;;  %s916_s21 = smov 0  }
   0x3   :  { %s918_s22 = smov 0   ;;  %s920_s23 = smov 0  }
   0x4 LB: > { %s671_s24 = sadd.s32 4294967295, %s874_s23   ;;  %s672_s25 = sadd.s32 4294967294, %s874_s23   ;;  %s874_s23 = sphi %s920_s23, %s18_s23   ;;  %s870_s22 = sphi %s918_s22, %s1104_s22   ;;  %s866_s21 = sphi %s916_s21, %s1103_s21   ;;  %s862_s20 = sphi %s914_s20, %s1102_s20   ;;  %s858_s19 = sphi %s912_s19, %s1101_s19   ;;  %s854_s18 = sphi %s910_s18, %s1100_s18  }
   0x5   : > { %s30_s26 = sadd.s32 1, %s870_s22  ;;  %s151_s27 = sadd.s32 1, %s862_s20 }
   0x6   : > { %p32_p0 = scmp.ge.s32.totalorder %s30_s26, 2  ;;  %p161_p1 = scmp.ne.s32.totalorder %s862_s20, %s858_s19 }
   0x7   : > { %p162_p2 = scmp.eq.s32.totalorder %s671_s24, 1  ;;  %p167_p3 = scmp.ne.s32.totalorder %s858_s19, %s854_s18 }
   0x8   : > { %s1106_s26 = smov (%p32_p0, %s30_s26), 0  ;;  %p168_p5 = scmp.eq.s32.totalorder %s672_s25, 1 }
   0x9   : > { %p950_p4 = por %p162_p2, %p161_p1  ;;  %s146_s29 = ssub.s32 %s870_s22, %s1106_s26 }
   0xa   : > { %p675_p6 = scmp.ge.s32.totalorder %s874_s23, 1  ;;  %p149_p7 = scmp.eq.s32.totalorder %s146_s29, 0 }
   0xb   : > { %p957_p8 = por %p168_p5, %p167_p3  ;;  %p211_p9 = scmp.lt.s32.totalorder %s874_s23, 3 }
   0xc   : > { %s963_s6 = scalar_select %p149_p7, %s862_s20, %s151_s27  }
   0xd   : > { %p212_p10 = pnand %p675_p6, %p211_p9 }
   0xe   : > { %p244_p11 = scmp.lt.s32.totalorder (!%p212_p10), %s866_s21, 1  ;;  %v876_v0 = vmov (!%p212_p10), 0   ;;  %v261_v1 = vld [vmem:[%s1094_s2] sm:$0xff] (!%p212_p10)  ;;  %v262_v2 = vld [vmem:[%s1094_s2 + $0x8] sm:$0xff] (!%p212_p10)  ;;  %vm282_vm0 = vcmask (!%p212_p10), 1043456   ;;  %v368_v7 = vld [vmem:[%s1096_s4 + $0x10] sm:$0xff] (!%p212_p10) }
   0xf   : > { %215 = sbr.rel (%p212_p10) target bundleno = 536 (0x218), region = 40  ;;  %321 = vmatprep.mubr.bf16.mxu0 (!%p212_p10), %v876_v0  ;;  %773 = vset.pattern.permute.xlu0 (!%p212_p10), %v876_v0  ;;  %v775_v9 = vld [vmem:[%s1093_s1] sm:$0xff] (!%p212_p10)   ;;  %vm278_vm1 = vcmask (!%p212_p10), 64512   ;;  %v372_v11 = vld [vmem:[%s1096_s4 + $0x30] sm:$0xff] (!%p212_p10)  ;;  %v367_v13 = vld [vmem:[%s1096_s4 + $0x8] sm:$0xff] (!%p212_p10)  ;;  %vm434_vm2 = vcmask (!%p212_p10), 130048  }
  0x10   : > { %265 = vperm.xlu0 (!%p212_p10), %773, %v261_v1   ;;  %489 = vmatprep.mubr.bf16.mxu1 (!%p212_p10), %v876_v0  ;;  %v370_v10 = vld [vmem:[%s1096_s4 + $0x20] sm:$0xff] (!%p212_p10)  ;;  %v369_v14 = vld [vmem:[%s1096_s4 + $0x18] sm:$0xff] (!%p212_p10)  ;;  %v371_v15 = vld [vmem:[%s1096_s4 + $0x28] sm:$0xff] (!%p212_p10)  ;;  %s877_s29 = smov (!%p212_p10), [#allocation2]  }
  0x11   : > { %774 = vset.pattern.permute.xlu1 (!%p212_p10), %v876_v0  ;;  %v366_v12 = vld [vmem:[%s1096_s4] sm:$0xff] (!%p212_p10)  ;;  %v373_v16 = vld [vmem:[%s1096_s4 + $0x38] sm:$0xff] (!%p212_p10)  ;;  %v777_v54 = vld [vmem:[%s1095_s3 + $0x8] sm:$0xff] (!%p212_p10)   ;;  %s800_s7 = sshll.u32 (!%p212_p10), %s877_s29, 4  ;;  %s801_s7 = int_to_ptr.vmem [resolvable:$false] %s800_s7 }
  0x12   : > { %376 = vperm.xlu1 (!%p212_p10), %774, %v366_v12   ;;  %v776_v53 = vld [vmem:[%s1095_s3] sm:$0xff] (!%p212_p10)   ;;  %v778_v55 = vld [vmem:[%s1095_s3 + $0x10] sm:$0xff] (!%p212_p10)   ;;  %v779_v56 = vld [vmem:[%s1095_s3 + $0x18] sm:$0xff] (!%p212_p10)   ;;  %s802_s8 = scalar_lea.vmem (!%p212_p10), %s801_s7, 2048 }
  0x14   : > { %270 = vperm.xlu0 (!%p212_p10), %773, %v262_v2  }
  0x16   : > { %s245_s9 = scalar_select %p244_p11, %s866_s21, 1  ;;  %381 = vperm.xlu1 %774, %v367_v13  }
  0x18   : > { %s703_s12 = sshll.u32 %s245_s9, 4  ;;  %386 = vperm.xlu0 %773, %v368_v7  }
  0x19   : > { %s251_s15 = scalar_lea.vmem %s1092_s0, %s703_s12  ;;  %s240_s12 = sand.u32 1, %s858_s19  }
  0x1a   : > { %v256_v3 = vld [vmem:[%s251_s15 + $0x8] sm:$0xff]  ;;  %v255_v4 = vld [vmem:[%s251_s15] sm:$0xff]  ;;  %391 = vperm.xlu1 %774, %v369_v14   ;;  %s676_s13 = sshll.u32 %s240_s12, 6  ;;  %s712_s15 = sshll.u32 %s866_s21, 10 }
  0x1b   : > { %v260_v5 = vpack.c.bf16 %v256_v3, %v256_v3  ;;  %v259_v6 = vpack.c.bf16 %v255_v4, %v255_v4  ;;  %s1025_s14 = scalar_lea.vmem [#allocation2], %s676_s13  ;;  %s1038_s25 = scalar_lea.hbm %s1097_s5, %s712_s15 }
  0x1c   : > { %396 = vperm.xlu0 %773, %v370_v10   ;;  %s592_s16 = sshll.u32 %s1025_s14, 4  ;;  %s1046_s21 = scalar_lea.sflag [#allocation3], %s240_s12  ;;  %s1040_s16 = int_to_ptr.vmem [resolvable:$true] %s592_s16 }
  0x1d   : > { %680 = vmatprep.subr.msk.bf16.mxu0 %vm282_vm0, %v260_v5  ;;  %v284_v8 = vsel %vm282_vm0, %v259_v6, 0  ;;  %s796_s27 = scalar_lea.vmem %s1040_s16, 1024  ;;  %p803_p1 = scmp.lt.s32.totalorder %s1040_s16, %s801_s7 }
  0x1e   : > { %290 = vmatpush1.bf16.msra.mxu0 %v284_v8  ;;  %401 = vperm.xlu1 %774, %v371_v15   ;;  %p797_p12 = scmp.ne.s32.totalorder %s1040_s16, %s796_s27  ;;  %p804_p2 = scmp.lt.s32.totalorder %s802_s8, %s796_s27 }
  0x20   : > { %406 = vperm.xlu0 %773, %v372_v11   ;;  %p798_p13 = pnand %p797_p12, %p950_p4  ;;  %p805_p3 = por %p804_p2, %p803_p1 }
  0x21   : > { %681 = vmatmul.mubr.msk.bf16.vlgmr.msra.gmra.mrb[0].mxu0 %vm278_vm1, %v775_v9 }
  0x22   : > { %479 = vmatprep.mubr.bf16.mxu0 %v876_v0  ;;  %411 = vperm.xlu1 %774, %v373_v16   ;;  %p799_p0 = pneg %p798_p13 }
  0x24   : > { %p806_p5 = pnand %p805_p3, %p799_p0 }
  0x8f   : > { %v266_v17 = vpop.permute.xlu0 %265 }
  0x91   : > { %v377_v57 = vpop.permute.xlu1 %376 }
  0x93   : > { %v271_v21 = vpop.permute.xlu0 %270 }
  0x95   : > { %v382_v58 = vpop.permute.xlu1 %381 }
  0x97   : > { %v387_v59 = vpop.permute.xlu0 %386 }
  0x99   : > { %v392_v60 = vpop.permute.xlu1 %391 }
  0xf4   : > { %v323_v18 = vpop.f32.mrb[0].mxu0 }
  0xf5   : > { %v324_v19 = vadd.f32 %v323_v18, %v266_v17  ;;  %v325_v20 = vpop.f32.mrb[1].mxu0 }
  0xf6   : > { %v326_v22 = vadd.f32 %v325_v20, %v266_v17  ;;  %v327_v23 = vpop.f32.mrb[2].mxu0  ;;  %v397_v17 = vpop.permute.xlu0 %396 }
  0xf7   : > { %v332_v24 = vsub.f32 0.0, %v324_v19  ;;  %v328_v25 = vadd.f32 %v327_v23, %v271_v21  ;;  %v329_v26 = vpop.f32.mrb[3].mxu0 }
  0xf8   : > { %v333_v27 = vsub.f32 0.0, %v326_v22  ;;  %v330_v28 = vadd.f32 %v329_v26, %v271_v21  ;;  %v402_v21 = vpop.permute.xlu1 %401 }
  0xf9   : > { %v336_v29 = vmul.f32 1.442695, %v332_v24  ;;  %v334_v30 = vsub.f32 0.0, %v328_v25 }
  0xfa   : > { %v338_v31 = vmul.f32 1.442695, %v333_v27  ;;  %v335_v32 = vsub.f32 0.0, %v330_v28 }
  0xfb   : > { %780 = vpow2.f32 %v336_v29  ;;  %v340_v33 = vmul.f32 1.442695, %v334_v30  ;;  %v407_v29 = vpop.permute.xlu0 %406 }
  0xfc   : > { %782 = vpow2.f32 %v338_v31  ;;  %v342_v34 = vmul.f32 1.442695, %v335_v32 }
  0xfd   : > { %784 = vpow2.f32 %v340_v33  ;;  %v412_v33 = vpop.permute.xlu1 %411 }
  0xfe   : > { %786 = vpow2.f32 %v342_v34 }
 0x105   : > { %v781_v35 = vpop.eup %780 }
 0x106   : > { %v783_v36 = vpop.eup %782  ;;  %v344_v37 = vadd.f32 1.0, %v781_v35 }
 0x107   : > { %v785_v38 = vpop.eup %784  ;;  %v345_v39 = vadd.f32 1.0, %v783_v36 }
 0x108   : > { %v787_v40 = vpop.eup %786  ;;  %788 = vrcp.f32 %v344_v37  ;;  %v346_v41 = vadd.f32 1.0, %v785_v38 }
 0x109   : > { %790 = vrcp.f32 %v345_v39  ;;  %v347_v42 = vadd.f32 1.0, %v787_v40 }
 0x10a   : > { %792 = vrcp.f32 %v346_v41 }
 0x10b   : > { %794 = vrcp.f32 %v347_v42 }
 0x112   : > { %v789_v43 = vpop.eup %788 }
 0x113   : > { %v791_v44 = vpop.eup %790  ;;  %v352_v47 = vmul.f32 %v789_v43, %v324_v19 }
 0x114   : > { %v793_v45 = vpop.eup %792  ;;  %v353_v49 = vmul.f32 %v791_v44, %v326_v22 }
 0x115   : > { %v795_v46 = vpop.eup %794  ;;  %v354_v48 = vmul.f32 %v793_v45, %v328_v25 }
 0x116   : > { %v355_v50 = vmul.f32 %v795_v46, %v330_v28 }
 0x117   : > { %v364_v51 = vpack.c.bf16 %v354_v48, %v352_v47 }
 0x118   : > { %v365_v52 = vpack.c.bf16 %v355_v50, %v353_v49 }
 0x11a   : > { %447 = vmatprep.subr.bf16.mxu0 %v365_v52  ;;  %713 = vmatprep.subr.bf16.mxu1 %v365_v52 }
 0x11b   : > { %448 = vmatpush1.bf16.msra.mxu0 %v364_v51  ;;  %714 = vmatpush1.bf16.msra.mxu1 %v364_v51 }
 0x11e   : > { %686 = vmatmul.mubr.msk.bf16.vlgmr.msra.gmra.mrb[4].mxu0 %vm434_vm2, %v776_v53  ;;  %687 = vmatmul.mubr.msk.bf16.vlgmr.msra.gmra.mrb[0].mxu1 %vm434_vm2, %v777_v54 }
 0x11f   : > { %499 = vmatprep.mubr.bf16.mxu1 %v876_v0 }
 0x126   : > { %688 = vmatmul.mubr.msk.bf16.gmra.mrb[4].mxu1 %vm434_vm2, %v778_v55 }
 0x127   : > { %509 = vmatprep.mubr.bf16.mxu1 %v876_v0 }
 0x12e   : > { %689 = vmatmul.mubr.msk.bf16.gmra.mrb[8].mxu1 %vm434_vm2, %v779_v56 }
 0x1f1   : > { %v481_v61 = vpop.f32.mrb[4].mxu0  ;;  %v491_v62 = vpop.f32.mrb[0].mxu1 }
 0x1f2   : > { %v482_v63 = vadd.f32 %v481_v61, %v377_v57  ;;  %v492_v1 = vadd.f32 %v491_v62, %v387_v59  ;;  %v483_v2 = vpop.f32.mrb[5].mxu0  ;;  %v493_v3 = vpop.f32.mrb[1].mxu1 }
 0x1f3   : > { %v484_v4 = vadd.f32 %v483_v2, %v377_v57  ;;  %v494_v0 = vadd.f32 %v493_v3, %v387_v59  ;;  %v485_v5 = vpop.f32.mrb[6].mxu0  ;;  %v495_v6 = vpop.f32.mrb[2].mxu1 }
 0x1f4   : > { %v486_v7 = vadd.f32 %v485_v5, %v382_v58  ;;  %v496_v8 = vadd.f32 %v495_v6, %v392_v60  ;;  %v487_v9 = vpop.f32.mrb[7].mxu0  ;;  %v497_v10 = vpop.f32.mrb[3].mxu1 }
 0x1f5   : > { %v704_v11 = vpack.c.bf16 %v484_v4, %v482_v63  ;;  %v706_v12 = vpack.c.bf16 %v494_v0, %v492_v1  ;;  %v488_v13 = vadd.f32 %v487_v9, %v382_v58  ;;  %v498_v14 = vadd.f32 %v497_v10, %v392_v60 }
 0x1f7   : > { %568 = vst [vmem:[%s1025_s14] sm:$0xff] %v704_v11  ;;  %570 = vst [vmem:[%s1025_s14 + $0x10] sm:$0xff] %v706_v12  ;;  %v705_v15 = vpack.c.bf16 %v488_v13, %v486_v7  ;;  %v707_v16 = vpack.c.bf16 %v498_v14, %v496_v8 }
 0x1f9   : > { %569 = vst [vmem:[%s1025_s14 + $0x8] sm:$0xff] %v705_v15  ;;  %571 = vst [vmem:[%s1025_s14 + $0x18] sm:$0xff] %v707_v16  ;;  %v501_v18 = vpop.f32.mrb[4].mxu1 }
 0x1fa   : > { %v502_v19 = vadd.f32 %v501_v18, %v397_v17  ;;  %v503_v20 = vpop.f32.mrb[5].mxu1 }
 0x1fb   : > { %v504_v22 = vadd.f32 %v503_v20, %v397_v17  ;;  %v505_v23 = vpop.f32.mrb[6].mxu1 }
 0x1fc   : > { %v506_v24 = vadd.f32 %v505_v23, %v402_v21  ;;  %v507_v25 = vpop.f32.mrb[7].mxu1 }
 0x1fd   : > { %v708_v26 = vpack.c.bf16 %v504_v22, %v502_v19  ;;  %v508_v27 = vadd.f32 %v507_v25, %v402_v21 }
 0x1ff   : > { %572 = vst [vmem:[%s1025_s14 + $0x20] sm:$0xff] %v708_v26  ;;  %v709_v28 = vpack.c.bf16 %v508_v27, %v506_v24 }
 0x201   : > { %573 = vst [vmem:[%s1025_s14 + $0x28] sm:$0xff] %v709_v28  ;;  %v511_v30 = vpop.f32.mrb[8].mxu1 }
 0x202   : > { %v512_v31 = vadd.f32 %v511_v30, %v407_v29  ;;  %v513_v32 = vpop.f32.mrb[9].mxu1 }
 0x203   : > { %v514_v34 = vadd.f32 %v513_v32, %v407_v29  ;;  %v515_v35 = vpop.f32.mrb[10].mxu1 }
 0x204   : > { %v516_v36 = vadd.f32 %v515_v35, %v412_v33  ;;  %v517_v37 = vpop.f32.mrb[11].mxu1 }
 0x205   : > { %v710_v38 = vpack.c.bf16 %v514_v34, %v512_v31  ;;  %v518_v39 = vadd.f32 %v517_v37, %v412_v33 }
 0x207   : > { %574 = vst [vmem:[%s1025_s14 + $0x30] sm:$0xff] %v710_v38  ;;  %v711_v40 = vpack.c.bf16 %v518_v39, %v516_v36 }
 0x209   : > { %575 = vst [vmem:[%s1025_s14 + $0x38] sm:$0xff] %v711_v40 }
 0x20a   : > { %809 = shalt.err (!%p806_p5)
}
 0x20b   : > { %s810_s9 = scalar_lea.hbm %s1038_s25, 1024  ;;  %s814_s12 = scalar_lea.hbm %s1097_s5, 2048 }
 0x20c   : > { %p811_p6 = scmp.ne.s32.totalorder %s1038_s25, %s810_s9  ;;  %p815_p10 = scmp.lt.u32.totalorder %s1038_s25, %s1097_s5 }
 0x20d   : > { %p816_p11 = scmp.lt.u32.totalorder %s814_s12, %s810_s9  ;;  %p818_p13 = scmp.lt.u32.totalorder %s810_s9, %s1038_s25 }
 0x20e   : > { %p812_p7 = pnand %p811_p6, %p950_p4 }
 0x20f   : > { %p817_p12 = por %p816_p11, %p815_p10 }
 0x210   : > { %p813_p9 = pneg %p812_p7 }
 0x211   : > { %p819_p0 = por %p818_p13, %p817_p12 }
 0x213   : > { %p820_p1 = pnand %p819_p0, %p813_p9 }
 0x215   : > { %823 = shalt.err (!%p820_p1)
}
 0x216   : > { %s878_s15 = smov 128   ;;  %s879_s17 = smov 8  }
 0x217   : > { %715 = dma.vmem_to_hbm [thread:$0]  (%p950_p4), %s1040_s16, 1024, %s1038_s25, %s1046_s21, %s878_s15, %s878_s15, %s879_s17  }
 0x218 PF: > { %p721_p2 = scmp.ge.s32.totalorder %s874_s23, 2  ;;  %s607_s24 = sand.u32 1, %s854_s18  }
 0x219   : > { %s608_s27 = scalar_lea.sflag [#allocation3], %s607_s24 }
 0x21a   : > { %p718_p3 = pnand %p721_p2, %p957_p8 }
 0x21c   : > { %849 = dma.done.wait (!%p718_p3), %s608_s27, 1024  }
 0x21d   : > { %851 = vsyncadd (!%p718_p3), %s608_s27, 4294966272  ;;  %s18_s23 = sadd.s32 1, %s874_s23   ;;  %s1100_s18 = smov %s858_s19 }
 0x21e   : > { %p15_p5 = scmp.ge.s32.totalorder %s18_s23, 4   ;;  %s1101_s19 = smov %s862_s20 }
 0x21f   : > { %s1102_s20 = smov %s963_s6  ;;  %s1103_s21 = smov %s870_s22 }
 0x220   : > { %s1104_s22 = smov %s1106_s26  ;;  %17 = sbr.rel (!%p15_p5) target bundleno = 4 (0x4), region = 75 }
 0x227   :  { %613 = vsyncpa [#allocation3], 1 }
 0x228   :  { %615 = vsyncpa [#allocation3 + $0x1], 1 }

// kernel: extra_position_prompt_sa_bottleneck.3
= control target key start
LH: loop header
LB: loop body
LE: loop exit
PB: predicated region body
PF: predicated region fallthrough
CT: control target
= control target key end

     0   :  { %s2908_s0 = inlined_call_operand.hbm [shape: bf16[2,64,256], index: 0, kind: input, shape index: {}, may-alias: {0,1}]   ;;  %s2909_s1 = inlined_call_operand.hbm [shape: bf16[2,64,256], index: 1, kind: input, shape index: {}, may-alias: {0,1}]   ;;  %s2910_s2 = inlined_call_operand.hbm [shape: bf16[16,256], index: 2, kind: input, shape index: {}]   ;;  %s2911_s3 = inlined_call_operand.hbm [shape: f32[2,8,256], index: 3, kind: input, shape index: {}]   ;;  %s2912_s4 = inlined_call_operand.hbm [shape: bf16[8,16], index: 4, kind: input, shape index: {}]   ;;  %s2913_s5 = inlined_call_operand.hbm [shape: f32[8,1], index: 5, kind: input, shape index: {}]   ;;  %s2914_s6 = inlined_call_operand.hbm [shape: f32[2,8,256], index: 6, kind: output, shape index: {}]  }
   0x1   :  { %2945 = sst [smem:[#allocation34_spill]] %s2908_s0 }
   0x2   :  { %2946 = sst [smem:[#allocation35_spill]] %s2909_s1 }
   0x3   :  { %2947 = sst [smem:[#allocation36_spill]] %s2910_s2 }
   0x4   :  { %2948 = sst [smem:[#allocation37_spill]] %s2911_s3 }
   0x5   :  { %2949 = sst [smem:[#allocation38_spill]] %s2912_s4 }
   0x6   :  { %2950 = sst [smem:[#allocation39_spill]] %s2913_s5 }
   0x7   :  { %2951 = sst [smem:[#allocation40_spill]] %s2914_s6 }
   0x8   :  { %11 = vsyncpa [#allocation3], 0 }
   0x9   :  { %13 = vsyncpa [#allocation3 + $0x1], 0 }
   0xa   :  { %14 = vsyncpa [#allocation6], 0 }
   0xb   :  { %16 = vsyncpa [#allocation6 + $0x1], 0 }
   0xc   :  { %17 = vsyncpa [#allocation9], 0 }
   0xd   :  { %19 = vsyncpa [#allocation9 + $0x1], 0 }
   0xe   :  { %20 = vsyncpa [#allocation12], 0 }
   0xf   :  { %21 = vsyncpa [#allocation4], 0 }
  0x10   :  { %23 = vsyncpa [#allocation4 + $0x1], 0  ;;  %s2107_s21 = smov 0   ;;  %s2109_s22 = smov 0  }
  0x11   :  { %s2111_s23 = smov 0   ;;  %s2113_s24 = smov 0  }
  0x12   :  { %s2115_s25 = smov 0   ;;  %s2117_s26 = smov 0  }
  0x13   :  { %s2119_s27 = smov 0   ;;  %s2121_s28 = smov 0  }
  0x14   :  { %s2123_s29 = smov 0   ;;  %s2125_s30 = smov 0  }
  0x15   :  { %s2127_s7 = smov 0   ;;  %s2129_s8 = smov 0  }
  0x16   :  { %s2131_s9 = smov 0   ;;  %s2133_s10 = smov 0  }
  0x17 LB: > { %2952 = sst [smem:[#allocation21_spill]] %s2016_s24  ;;  %s2176_s11 = sadd.s32 4294967295, %s2056_s10   ;;  %s2056_s10 = sphi %s2133_s10, %s29_s10   ;;  %s2052_s9 = sphi %s2131_s9, %s3032_s9   ;;  %s2048_s8 = sphi %s2129_s8, %s3031_s8   ;;  %s2044_s7 = sphi %s2127_s7, %s3030_s7   ;;  %s2040_s30 = sphi %s2125_s30, %s3029_s30   ;;  %s2036_s29 = sphi %s2123_s29, %s3028_s29   ;;  %s2032_s28 = sphi %s2121_s28, %s3027_s28   ;;  %s2028_s27 = sphi %s2119_s27, %s3026_s27   ;;  %s2024_s26 = sphi %s2117_s26, %s3020_s26   ;;  %s2020_s25 = sphi %s2115_s25, %s3019_s25   ;;  %s2016_s24 = sphi %s2113_s24, %s3018_s24   ;;  %s2012_s23 = sphi %s2111_s23, %s3025_s23   ;;  %s2008_s22 = sphi %s2109_s22, %s3024_s22   ;;  %s2004_s21 = sphi %s2107_s21, %s3023_s21  }
  0x18   : > { %2953 = sst [smem:[#allocation22_spill]] %s2020_s25  ;;  %s1337_s12 = sadd.s32 4294967294, %s2056_s10  }
  0x19   : > { %2954 = sst [smem:[#allocation23_spill]] %s2024_s26  ;;  %p2918_p0 = scmp.eq.s32.totalorder %s2176_s11, 0 }
  0x1a   : > { %2955 = sst [smem:[#allocation24_spill]] %s2040_s30  ;;  %p89_p1 = scmp.ne.s32.totalorder %s2020_s25, %s2016_s24 }
  0x1b   : > { %2956 = sst [smem:[#allocation25_spill]] %s2044_s7  ;;  %p115_p2 = scmp.ne.s32.totalorder %s2008_s22, %s2004_s21 }
  0x1c   : > { %p2186_p4 = por %p89_p1, %p2918_p0  ;;  %p217_p5 = scmp.eq.s32.totalorder %s1337_s12, 3 }
  0x1d   : > { %p2192_p6 = por %p115_p2, %p2918_p0  ;;  %p1338_p7 = scmp.ge.s32.totalorder %s2056_s10, 1 }
  0x1e   : > { %s2957_s13 = scalar_select %p2186_p4, 1, 0 }
  0x1f   : > { %s2959_s14 = scalar_select %p2192_p6, 1, 0 }
  0x20   : > { %2958 = sst [smem:[#allocation26_spill]] %s2957_s13  ;;  %p2197_p8 = por %p217_p5, %p89_p1 }
  0x21   : > { %2960 = sst [smem:[#allocation27_spill]] %s2959_s14  ;;  %p224_p9 = scmp.lt.s32.totalorder %s2056_s10, 5 }
  0x22   : > { %s2961_s15 = scalar_select %p2197_p8, 1, 0 }
  0x23   : > { %p2202_p10 = pnand %p1338_p7, %p224_p9  ;;  %s2058_s17 = smov [#allocation10]  }
  0x24   : > { %2962 = sst [smem:[#allocation28_spill]] %s2961_s15  ;;  %s237_s18 = sshll.u32 %s2058_s17, 4  ;;  %s238_s18 = int_to_ptr.vmem [resolvable:$true] %s237_s18 }
  0x25   : > { %s2963_s16 = scalar_select %p2202_p10, 1, 0 }
  0x26   : > { %p1450_p11 = pneg %p2202_p10  ;;  %s38_s20 = sadd.s32 1, %s2048_s8 }
  0x27   : > { %2964 = sst [smem:[#allocation29_spill]] %s2963_s16  ;;  %s2966_s4 = sld [smem:[#allocation38_spill]] }
  0x28   : > { %p2210_p12 = pnand %p1450_p11, %p2918_p0 }
  0x2a   : > { %p2937_p1 = pneg %p2210_p12 }
  0x2d   : > { %s1713_s15 = scalar_lea.hbm %s2966_s4, 64 }
  0x2e   : > { %p1714_p13 = scmp.ne.s32.totalorder %s2966_s4, %s1713_s15  ;;  %p1720_p7 = scmp.lt.u32.totalorder %s1713_s15, %s2966_s4 }
  0x30   : > { %p1716_p2 = pnand %p2937_p1, %p1714_p13 }
  0x32   : > { %p1717_p5 = pneg %p1716_p2 }
  0x34   : > { %p1722_p9 = pnand %p1720_p7, %p1717_p5 }
  0x36   : > { %1725 = shalt.err (!%p1722_p9)
}
  0x37   : > { %s1726_s7 = scalar_lea.vmem %s238_s18, 64  ;;  %p1734_p8 = scmp.lt.s32.totalorder %s238_s18, %s238_s18 }
  0x38   : > { %p1727_p11 = scmp.ne.s32.totalorder %s238_s18, %s1726_s7  ;;  %p1735_p6 = scmp.lt.s32.totalorder %s1726_s7, %s1726_s7 }
  0x3a   : > { %p1729_p0 = pnand %p1727_p11, %p2937_p1  ;;  %p1736_p4 = por %p1735_p6, %p1734_p8 }
  0x3c   : > { %p1730_p3 = pneg %p1729_p0 }
  0x3e   : > { %p1737_p10 = pnand %p1736_p4, %p1730_p3 }
  0x40   : > { %1740 = shalt.err (!%p1737_p10)
}
  0x41   : > { %1453 = dma.hbm_to_vmem [thread:$0]  (!%p2210_p12), %s2966_s4, 64, %s238_s18, [#allocation9]  }
  0x42   : > { %p39_p0 = scmp.ge.s32.totalorder %s38_s20, 2  ;;  %s41_s30 = sadd.s32 1, %s2052_s9 }
  0x43   : > { %p2936_p3 = scmp.eq.s32.totalorder %s2056_s10, 0  ;;  %s76_s7 = sadd.s32 1, %s2024_s26 }
  0x44   : > { %s3034_s20 = smov (%p39_p0, %s38_s20), 0  ;;  %s3036_s30 = smov (!%p39_p0, %s41_s30), %s2052_s9 }
  0x45   : > { %2967 = sst [smem:[#allocation30_spill]] %s3034_s20  ;;  %s2245_s15 = ssub.s32 %s2048_s8, %s3034_s20 }
  0x46   : > { %p83_p4 = scmp.ne.s32.totalorder %s2024_s26, %s2020_s25  ;;  %p43_p6 = scmp.ge.s32.totalorder %s3036_s30, 2 }
  0x47   : > { %p2969_p13 = scmp.eq.s32.totalorder %s2176_s11, 3  ;;  %p2935_p5 = scmp.lt.s32.totalorder %s2056_s10, 4 }
  0x48   : > { %p2252_p10 = por %p83_p4, %p2936_p3  ;;  %s3038_s30 = smov (%p43_p6, %s3036_s30), 0 }
  0x49   : > { %p2258_p2 = por %p2969_p13, %p83_p4  ;;  %2972 = sst [smem:[#allocation32_spill]] %s3038_s30 }
  0x4a   : > { %s2267_s12 = ssub.s32 %s2052_s9, %s3038_s30  ;;  %s282_s24 = sand.u32 1, %s2024_s26  }
  0x4b   : > { %s2970_s21 = scalar_select %p2258_p2, 1, 0 }
  0x4c   : > { %s73_s6 = sor.u32 %s2245_s15, %s2267_s12  ;;  %s2273_s4 = sshll.u32 %s282_s24, 3 }
  0x4d   : > { %2971 = sst [smem:[#allocation31_spill]] %s2970_s21  ;;  %p74_p7 = scmp.eq.s32.totalorder %s73_s6, 0 }
  0x4e   : > { %s1345_s20 = sshll.u32 %s2052_s9, 4  ;;  %s284_s25 = scalar_lea.vmem [#allocation5], %s2273_s4 }
  0x4f   : > { %s2277_s14 = scalar_select %p74_p7, %s2024_s26, %s76_s7  }
  0x50   : > { %s1203_s21 = sadd.s32 %s2048_s8, %s1345_s20  ;;  %s293_s16 = sshll.u32 %s284_s25, 4  ;;  %s2284_s16 = int_to_ptr.vmem [resolvable:$true] %s293_s16 }
  0x51   : > { %2973 = sst [smem:[#allocation33_spill]] %s2277_s14  ;;  %s1346_s13 = sshll.u32 %s1203_s21, 6 }
  0x52   : > { %s2974_s1 = sld [smem:[#allocation35_spill]]  ;;  %p2292_p9 = pnand %p2935_p5, %p2252_p10 }
  0x53   : > { %s2976_s20 = sand.u32 1, %s2056_s10  }
  0x54   : > { %s2975_s7 = scalar_select %p2292_p9, 1, 0 }
  0x55   : > { %s2298_s25 = scalar_lea.sflag [#allocation6], %s2976_s20  ;;  %p2940_p0 = pneg %p2292_p9 }
  0x58   : > { %s1205_s30 = scalar_lea.hbm %s2974_s1, %s1346_s13  ;;  %s1746_s18 = scalar_lea.hbm %s2974_s1, 2048 }
  0x59   : > { %s2286_s17 = scalar_lea.hbm %s1205_s30, 768  ;;  %s1771_s2 = scalar_lea.hbm %s1205_s30, 896 }
  0x5a   : > { %p1742_p11 = scmp.ne.s32.totalorder %s2286_s17, %s1771_s2  ;;  %p1747_p10 = scmp.lt.u32.totalorder %s2286_s17, %s2974_s1 }
  0x5b   : > { %p1748_p13 = scmp.lt.u32.totalorder %s1746_s18, %s1771_s2  ;;  %p1750_p8 = scmp.lt.u32.totalorder %s1771_s2, %s2286_s17 }
  0x5c   : > { %p1744_p4 = pnand %p2940_p0, %p1742_p11 }
  0x5d   : > { %p1749_p7 = por %p1748_p13, %p1747_p10 }
  0x5e   : > { %p1745_p6 = pneg %p1744_p4 }
  0x5f   : > { %p1751_p5 = por %p1750_p8, %p1749_p7 }
  0x61   : > { %p1752_p3 = pnand %p1751_p5, %p1745_p6 }
  0x63   : > { %1755 = shalt.err (!%p1752_p3)
}
  0x64   : > { %s1756_s30 = scalar_lea.vmem %s2284_s16, 128  ;;  %s2059_s24 = smov [#allocation5]  }
  0x65   : > { %p1757_p11 = scmp.ne.s32.totalorder %s2284_s16, %s1756_s30  ;;  %s1761_s20 = sshll.u32 %s2059_s24, 4  ;;  %s1762_s20 = int_to_ptr.vmem [resolvable:$false] %s1761_s20 }
  0x66   : > { %s1763_s3 = scalar_lea.vmem %s1762_s20, 256  ;;  %p1764_p2 = scmp.lt.s32.totalorder %s2284_s16, %s1762_s20 }
  0x67   : > { %p1759_p4 = pnand %p1757_p11, %p2940_p0  ;;  %p1765_p10 = scmp.lt.s32.totalorder %s1763_s3, %s1756_s30 }
  0x69   : > { %p1760_p1 = pneg %p1759_p4  ;;  %p1766_p13 = por %p1765_p10, %p1764_p2 }
  0x6b   : > { %p1767_p8 = pnand %p1766_p13, %p1760_p1 }
  0x6d   : > { %1770 = shalt.err (!%p1767_p8)
}
  0x6e   : > { %s2060_s2 = smov 128   ;;  %s2943_s13 = smov 64  }
  0x6f   : > { %s2062_s18 = smov 4   ;;  %s2063_s21 = smov [#allocation11]  }
  0x70   : > { %1463 = dma.hbm_to_vmem [thread:$0]  (!%p2292_p9), %s2286_s17, 128, %s2284_s16, %s2298_s25, %s2060_s2, %s2943_s13, %s2062_s18  }
  0x71   : > { %s248_s6 = sshll.u32 %s2063_s21, 4  ;;  %s2977_s5 = sld [smem:[#allocation39_spill]]  ;;  %s249_s6 = int_to_ptr.vmem [resolvable:$true] %s248_s6 }
  0x72   : > { %p2978_p3 = pneg %p2210_p12 }
  0x77   : > { %s1772_s20 = scalar_lea.hbm %s2977_s5, 128 }
  0x78   : > { %p1773_p1 = scmp.ne.s32.totalorder %s2977_s5, %s1772_s20  ;;  %p1779_p6 = scmp.lt.u32.totalorder %s1772_s20, %s2977_s5 }
  0x7a   : > { %p1775_p2 = pnand %p1773_p1, %p2978_p3 }
  0x7c   : > { %p1776_p5 = pneg %p1775_p2 }
  0x7e   : > { %p1781_p7 = pnand %p1779_p6, %p1776_p5 }
  0x80   : > { %1784 = shalt.err (!%p1781_p7)
}
  0x81   : > { %s1785_s16 = scalar_lea.vmem %s249_s6, 128  ;;  %p2979_p4 = pmov %p2978_p3 }
  0x82   : > { %p1786_p11 = scmp.ne.s32.totalorder %s249_s6, %s1785_s16  ;;  %p1793_p8 = scmp.lt.s32.totalorder %s249_s6, %s249_s6 }
  0x83   : > { %p1794_p0 = scmp.lt.s32.totalorder %s1785_s16, %s1785_s16 }
  0x84   : > { %p1788_p10 = pnand %p1786_p11, %p2979_p4 }
  0x85   : > { %p1795_p9 = por %p1794_p0, %p1793_p8 }
  0x86   : > { %p1789_p13 = pneg %p1788_p10 }
  0x88   : > { %p1796_p1 = pnand %p1795_p9, %p1789_p13 }
  0x8a   : > { %1799 = shalt.err (!%p1796_p1)
}
  0x8b   : > { %1456 = dma.hbm_to_vmem [thread:$0]  (!%p2210_p12), %s2977_s5, 128, %s249_s6, [#allocation12]  }
  0x8c   : > { %p46_p9 = scmp.eq.s32.totalorder %s2267_s12, 0  ;;  %s48_s26 = sadd.s32 1, %s2036_s29 }
  0x8d   : > { %p55_p0 = scmp.ne.s32.totalorder %s2036_s29, %s2032_s28  ;;  %p61_p3 = scmp.ne.s32.totalorder %s2032_s28, %s2028_s27 }
  0x8e   : > { %s2355_s14 = scalar_select %p46_p9, %s2036_s29, %s48_s26  }
  0x8f   : > { %p2980_p2 = scmp.eq.s32.totalorder %s2056_s10, 0  ;;  %p2981_p6 = scmp.eq.s32.totalorder %s2176_s11, 0 }
  0x90   : > { %s259_s21 = sand.u32 1, %s2036_s29   ;;  %s1389_s30 = sshll.u32 %s2052_s9, 10 }
  0x91   : > { %p57_p5 = por %p2980_p2, %p55_p0  ;;  %p2361_p7 = por %p2981_p6, %p61_p3 }
  0x92   : > { %s1430_s24 = smul.u32 48, %s259_s21  ;;  %s2983_s0 = sld [smem:[#allocation34_spill]] }
  0x93   : > { %p2984_p12 = scmp.lt.s32.totalorder %s2056_s10, 4  ;;  %s2380_s1 = scalar_lea.sflag [#allocation3], %s259_s21 }
  0x94   : > { %s263_s12 = scalar_lea.vmem [#allocation2], %s1430_s24 }
  0x95   : > { %p2374_p11 = pnand %p2984_p12, %p57_p5  ;;  %s270_s16 = sshll.u32 %s263_s12, 4  ;;  %s2378_s16 = int_to_ptr.vmem [resolvable:$true] %s270_s16 }
  0x97   : > { %p1802_p10 = pneg %p2374_p11 }
  0x98   : > { %s2370_s6 = scalar_lea.hbm %s2983_s0, %s1389_s30  ;;  %s1805_s20 = scalar_lea.hbm %s2983_s0, 2048 }
  0x99   : > { %s1800_s17 = scalar_lea.hbm %s2370_s6, 768  ;;  %p1806_p1 = scmp.lt.u32.totalorder %s2370_s6, %s2983_s0 }
  0x9a   : > { %p1801_p4 = scmp.ne.s32.totalorder %s2370_s6, %s1800_s17  ;;  %p1807_p9 = scmp.lt.u32.totalorder %s1805_s20, %s1800_s17 }
  0x9b   : > { %p1809_p3 = scmp.lt.u32.totalorder %s1800_s17, %s2370_s6 }
  0x9c   : > { %p1803_p13 = pnand %p1802_p10, %p1801_p4  ;;  %p1808_p0 = por %p1807_p9, %p1806_p1 }
  0x9e   : > { %p1804_p8 = pneg %p1803_p13  ;;  %p1810_p2 = por %p1809_p3, %p1808_p0 }
  0xa0   : > { %p1811_p5 = pnand %p1810_p2, %p1804_p8 }
  0xa2   : > { %1814 = shalt.err (!%p1811_p5)
}
  0xa3   : > { %s1815_s21 = scalar_lea.vmem %s2378_s16, 768  ;;  %s2064_s24 = smov [#allocation2]  }
  0xa4   : > { %p1816_p6 = scmp.ne.s32.totalorder %s2378_s16, %s1815_s21  ;;  %s1820_s12 = sshll.u32 %s2064_s24, 4  ;;  %s1821_s12 = int_to_ptr.vmem [resolvable:$false] %s1820_s12 }
  0xa5   : > { %s1822_s13 = scalar_lea.vmem %s1821_s12, 1536  ;;  %p1823_p13 = scmp.lt.s32.totalorder %s2378_s16, %s1821_s12 }
  0xa6   : > { %p1818_p12 = pnand %p1816_p6, %p1802_p10  ;;  %p1824_p1 = scmp.lt.s32.totalorder %s1822_s13, %s1815_s21 }
  0xa8   : > { %p1819_p4 = pneg %p1818_p12  ;;  %p1825_p9 = por %p1824_p1, %p1823_p13 }
  0xaa   : > { %p1826_p0 = pnand %p1825_p9, %p1819_p4 }
  0xac   : > { %1829 = shalt.err (!%p1826_p0)
}
  0xad   : > { %s2065_s17 = smov 8   ;;  %s1348_s26 = sshll.u32 %s2048_s8, 6 }
  0xae   : > { %1460 = dma.hbm_to_vmem [thread:$0]  (!%p2374_p11), %s2370_s6, 768, %s2378_s16, %s2380_s1, %s2060_s2, %s2060_s2, %s2065_s17  }
  0xaf   : > { %s102_s30 = sadd.s32 1, %s2012_s23  ;;  %p109_p10 = scmp.ne.s32.totalorder %s2012_s23, %s2008_s22 }
  0xb0   : > { %p2986_p8 = scmp.eq.s32.totalorder %s2245_s15, 0  ;;  %p2987_p3 = scmp.eq.s32.totalorder %s2056_s10, 0 }
  0xb1   : > { %s305_s20 = sand.u32 1, %s2012_s23   ;;  %s2988_s12 = sld [smem:[#allocation36_spill]] }
  0xb2   : > { %s2417_s27 = scalar_select %p2986_p8, %s2012_s23, %s102_s30  }
  0xb3   : > { %p111_p2 = por %p109_p10, %p2987_p3  ;;  %s1347_s3 = sshll.u32 %s305_s20, 3 }
  0xb4   : > { %p2989_p5 = scmp.lt.s32.totalorder %s2056_s10, 4  ;;  %s307_s15 = scalar_lea.vmem [#allocation7], %s1347_s3 }
  0xb5   : > { %s313_s16 = sshll.u32 %s307_s15, 4  ;;  %s2433_s16 = int_to_ptr.vmem [resolvable:$true] %s313_s16 }
  0xb6   : > { %p2429_p11 = pnand %p2989_p5, %p111_p2 }
  0xb7   : > { %s2425_s13 = scalar_lea.hbm %s2988_s12, %s1348_s26  ;;  %s1835_s30 = scalar_lea.hbm %s2988_s12, 256 }
  0xb8   : > { %s1830_s1 = scalar_lea.hbm %s2425_s13, 128  ;;  %p1832_p12 = pneg %p2429_p11 }
  0xb9   : > { %p1831_p6 = scmp.ne.s32.totalorder %s2425_s13, %s1830_s1  ;;  %p1836_p1 = scmp.lt.u32.totalorder %s2425_s13, %s2988_s12 }
  0xba   : > { %p1837_p9 = scmp.lt.u32.totalorder %s1835_s30, %s1830_s1  ;;  %p1839_p10 = scmp.lt.u32.totalorder %s1830_s1, %s2425_s13 }
  0xbb   : > { %p1833_p4 = pnand %p1832_p12, %p1831_p6 }
  0xbc   : > { %p1838_p0 = por %p1837_p9, %p1836_p1 }
  0xbd   : > { %p1834_p13 = pneg %p1833_p4 }
  0xbe   : > { %p1840_p8 = por %p1839_p10, %p1838_p0 }
  0xc0   : > { %p1841_p3 = pnand %p1840_p8, %p1834_p13 }
  0xc2   : > { %1844 = shalt.err (!%p1841_p3)
}
  0xc3   : > { %s1845_s3 = scalar_lea.vmem %s2433_s16, 128  ;;  %s2066_s24 = smov [#allocation7]  }
  0xc4   : > { %p1846_p2 = scmp.ne.s32.totalorder %s2433_s16, %s1845_s3  ;;  %s1850_s15 = sshll.u32 %s2066_s24, 4  ;;  %s1851_s15 = int_to_ptr.vmem [resolvable:$false] %s1850_s15 }
  0xc5   : > { %s1852_s17 = scalar_lea.vmem %s1851_s15, 256  ;;  %p1853_p4 = scmp.lt.s32.totalorder %s2433_s16, %s1851_s15 }
  0xc6   : > { %p1848_p5 = pnand %p1846_p2, %p1832_p12  ;;  %p1854_p1 = scmp.lt.s32.totalorder %s1852_s17, %s1845_s3 }
  0xc8   : > { %p1849_p6 = pneg %p1848_p5  ;;  %p1855_p9 = por %p1854_p1, %p1853_p4 }
  0xca   : > { %p1856_p0 = pnand %p1855_p9, %p1849_p6 }
  0xcc   : > { %1859 = shalt.err (!%p1856_p0)
}
  0xcd   : > { %s2991_s1 = smov 64   ;;  %s1350_s26 = sshll.u32 %s2052_s9, 1 }
  0xce   : > { %1466 = dma.hbm_to_vmem [thread:$0]  (!%p2429_p11), %s2425_s13, 128, %s2433_s16, %s2298_s25, %s2060_s2, %s2991_s1, %s2062_s18  }
  0xcf   : > { %s332_s30 = sadd.s32 %s2048_s8, %s1350_s26  ;;  %s327_s20 = scalar_lea.vmem [#allocation8], %s2273_s4 }
  0xd0   : > { %s336_s21 = sshll.u32 %s327_s20, 4  ;;  %s1351_s3 = sshll.u32 %s332_s30, 7  ;;  %s2467_s21 = int_to_ptr.vmem [resolvable:$true] %s336_s21 }
  0xd1   : > { %s2992_s15 = sld [smem:[#allocation37_spill]]  ;;  %s2993_s0 = sand.u32 1, %s2056_s10  }
  0xd2   : > { %s324_s5 = scalar_lea.sflag [#allocation9], %s2993_s0  ;;  %p2994_p13 = scmp.ne.s32.totalorder %s2975_s7, 0 }
  0xd4   : > { %p2995_p10 = pneg %p2994_p13 }
  0xd7   : > { %s334_s17 = scalar_lea.hbm %s2992_s15, %s1351_s3  ;;  %s1865_s4 = scalar_lea.hbm %s2992_s15, 512 }
  0xd8   : > { %s1860_s12 = scalar_lea.hbm %s334_s17, 128  ;;  %p1866_p11 = scmp.lt.u32.totalorder %s334_s17, %s2992_s15 }
  0xd9   : > { %p1861_p12 = scmp.ne.s32.totalorder %s334_s17, %s1860_s12  ;;  %p1867_p2 = scmp.lt.u32.totalorder %s1865_s4, %s1860_s12 }
  0xda   : > { %p1869_p6 = scmp.lt.u32.totalorder %s1860_s12, %s334_s17 }
  0xdb   : > { %p1863_p8 = pnand %p1861_p12, %p2995_p10  ;;  %p1868_p5 = por %p1867_p2, %p1866_p11 }
  0xdd   : > { %p1864_p3 = pneg %p1863_p8  ;;  %p1870_p4 = por %p1869_p6, %p1868_p5 }
  0xdf   : > { %p1871_p1 = pnand %p1870_p4, %p1864_p3 }
  0xe1   : > { %1874 = shalt.err (!%p1871_p1)
}
  0xe2   : > { %s1875_s0 = scalar_lea.vmem %s2467_s21, 128  ;;  %p2996_p0 = pmov %p2995_p10 }
  0xe3   : > { %p1876_p9 = scmp.ne.s32.totalorder %s2467_s21, %s1875_s0  ;;  %s2067_s16 = smov [#allocation8]  }
  0xe4   : > { %s1880_s1 = sshll.u32 %s2067_s16, 4  ;;  %s1881_s1 = int_to_ptr.vmem [resolvable:$false] %s1880_s1 }
  0xe5   : > { %p1878_p12 = pnand %p1876_p9, %p2996_p0  ;;  %s1882_s26 = scalar_lea.vmem %s1881_s1, 256 }
  0xe6   : > { %p1883_p8 = scmp.lt.s32.totalorder %s2467_s21, %s1881_s1  ;;  %p1884_p11 = scmp.lt.s32.totalorder %s1882_s26, %s1875_s0 }
  0xe7   : > { %p1879_p10 = pneg %p1878_p12 }
  0xe8   : > { %p1885_p2 = por %p1884_p11, %p1883_p8 }
  0xea   : > { %p1886_p5 = pnand %p1885_p2, %p1879_p10 }
  0xec   : > { %1889 = shalt.err (!%p1886_p5)
}
  0xed   : > { %1469 = dma.hbm_to_vmem [thread:$0]  (!%p2994_p13), %s334_s17, 128, %s2467_s21, %s324_s5  }
  0xee   : > { %s2997_s12 = sld [smem:[#allocation29_spill]] }
  0xf4   : > { %p2998_p3 = scmp.ne.s32.totalorder %s2997_s12, 0 }
  0xf5   : > { %s347_s30 = sand.u32 (!%p2998_p3), 1, %s2032_s28  }
  0xf6   : > { %345 = sbr.rel (%p2998_p3) target bundleno = 1500 (0x5dc), region = 44  ;;  %s348_s3 = scalar_lea.sflag (!%p2998_p3), [#allocation3], %s347_s30 }
  0xf7   : > { %s1431_s20 = smul.u32 (!%p2998_p3), 48, %s347_s30 }
  0xf9   : > { %s2495_s6 = scalar_lea.vmem (!%p2998_p3), [#allocation2], %s1431_s20 }
  0xfd   : > { %1975 = dma.done.wait (%p2361_p7), %s348_s3, 768  }
  0xfe   : > { %1977 = vsyncadd (%p2361_p7), %s348_s3, 4294966528  ;;  %s2999_s24 = sld [smem:[#allocation22_spill]]  ;;  %s356_s5 = sand.u32 1, %s2176_s11  }
  0xff   : > { %s3000_s7 = sld [smem:[#allocation26_spill]]  ;;  %s357_s25 = scalar_lea.sflag [#allocation6], %s356_s5 }
 0x104   : > { %s358_s21 = sand.u32 1, %s2999_s24  }
 0x105   : > { %s2505_s17 = sshll.u32 %s358_s21, 3  ;;  %p3001_p13 = scmp.ne.s32.totalorder %s3000_s7, 0 }
 0x106   : > { %s360_s2 = scalar_lea.vmem [#allocation5], %s2505_s17 }
 0x107   : > { %1979 = dma.done.wait (%p3001_p13), %s357_s25, 128  }
 0x108   : > { %1981 = vsyncadd (%p3001_p13), %s357_s25, 4294967168  ;;  %s3002_s19 = sld [smem:[#allocation27_spill]]  ;;  %s367_s4 = sand.u32 1, %s2008_s22  }
 0x109   : > { %s1354_s18 = sshll.u32 %s367_s4, 3 }
 0x10a   : > { %s369_s13 = scalar_lea.vmem [#allocation7], %s1354_s18 }
 0x10e   : > { %p3003_p7 = scmp.ne.s32.totalorder %s3002_s19, 0 }
 0x110   : > { %1983 = dma.done.wait (%p3003_p7), %s357_s25, 128  }
 0x111   : > { %1985 = vsyncadd (%p3003_p7), %s357_s25, 4294967168  ;;  %s375_s0 = scalar_lea.sflag [#allocation9], %s356_s5  ;;  %s378_s16 = scalar_lea.vmem [#allocation8], %s2505_s17 }
 0x112   : > { %1987 = dma.done.wait (%p3001_p13), %s375_s0, 128  }
 0x113   : > { %1989 = vsyncadd (%p3001_p13), %s375_s0, 4294967168  ;;  %p3004_p6 = scmp.eq.s32.totalorder %s2176_s11, 0 }
 0x115   : > { %1991 = dma.done.wait (%p3004_p6), [#allocation9], 64   ;;  %p3005_p4 = pmov %p3004_p6 }
 0x117   : > { %1993 = vsyncadd (%p3005_p4), [#allocation9], 4294967232  ;;  %p3006_p1 = pmov %p3005_p4 }
 0x119   : > { %1995 = dma.done.wait (%p3006_p1), [#allocation12], 128   ;;  %p3007_p9 = pmov %p3006_p1 }
 0x11a   : > { %v2068_v0 = vmov 0   ;;  %v1602_v1 = vld [vmem:[%s369_s13] sm:$0xff]   ;;  %v1603_v6 = vld [vmem:[%s360_s2] sm:$0xff]   ;;  %vm473_vm0 = vcmask 130048   ;;  %vm2070_vm1 = vmmov 0   ;;  %s3008_s11 = sld [smem:[#allocation25_spill]] }
 0x11b   : > { %1997 = vsyncadd (%p3007_p9), [#allocation12], 4294967168  ;;  %530 = vmatprep.mubr.bf16.mxu1 %v2068_v0  ;;  %699 = vmatprep.mubr.bf16.mxu0 %v2068_v0  ;;  %v1604_v2 = vld [vmem:[%s2495_s6 + $0x14] ss:$8 sps:$4 sm:$0xff]   ;;  %v1606_v3 = vld [vmem:[%s2495_s6 + $0x10] ss:$8 sps:$4 sm:$0xff]  }
 0x11c   : > { %447 = vxpose.xlu0.c.b16.start.end [1/1] (short) %v1602_v1, 128  ;;  %498 = vmatprep.subr.bf16.mxu1 %v1604_v2  ;;  %v1607_v4 = vld [vmem:[%s2495_s6 + $0x4] ss:$8 sps:$4 sm:$0xff]   ;;  %v1609_v5 = vld [vmem:[%s2495_s6] ss:$8 sps:$4 sm:$0xff]   ;;  %s3009_s1 = sld [smem:[#allocation24_spill]]  ;;  %s3010_s26 = sld [smem:[#allocation31_spill]] }
 0x11d   : > { %499 = vmatpush1.bf16.msra.mxu1 %v1606_v3  ;;  %667 = vmatprep.subr.bf16.mxu0 %v1607_v4  ;;  %s429_s3 = scalar_lea.vmem [#allocation13], %s2505_s17  ;;  %s3011_s25 = sld [smem:[#allocation40_spill]] }
 0x11e   : > { %668 = vmatpush1.bf16.msra.mxu0 %v1609_v5  ;;  %s1148_s4 = scalar_lea.sflag [#allocation4], %s358_s21  ;;  %s2071_s17 = smov [#allocation13]  }
 0x11f   : > { %s1894_s13 = sshll.u32 %s2071_s17, 4  ;;  %s1895_s13 = int_to_ptr.vmem [resolvable:$false] %s1894_s13 }
 0x120   : > { %s1385_s12 = sshll.u32 %s3008_s11, 1  ;;  %s1896_s0 = scalar_lea.vmem %s1895_s13, 256 }
 0x122   : > { %s1159_s30 = sadd.s32 %s3009_s1, %s1385_s12  ;;  %p3013_p12 = scmp.ne.s32.totalorder %s3010_s26, 0 }
 0x123   : > { %s1386_s20 = sshll.u32 %s1159_s30, 7  ;;  %s3012_s2 = smov %s3011_s25 }
 0x124   : > { %s2829_s19 = scalar_lea.hbm %s3011_s25, %s1386_s20 }
 0x139   : > { %617 = vxpose.xlu0.c.b16.start.end [1/1] (short) %v1603_v6, 128 }
 0x142   : > { %1601 = vset.pattern.permute.xlu0 %v2068_v0 }
 0x182   : > { %v455_v7 = vpop.trf.xlu0 }
 0x183   : > { %1362 = vmatmul.mubr.msk.bf16.vlgmr.msra.gmra.mrb[0].mxu1 %vm473_vm0, %v455_v7 }
 0x184   : > { %540 = vmatprep.mubr.bf16.mxu1 %v2068_v0 }
 0x186   : > { %v456_v8 = vpop.trf.xlu0 }
 0x18a   : > { %v457_v9 = vpop.trf.xlu0 }
 0x18b   : > { %1363 = vmatmul.mubr.msk.bf16.gmra.mrb[4].mxu1 %vm473_vm0, %v456_v8 }
 0x18c   : > { %550 = vmatprep.mubr.bf16.mxu1 %v2068_v0 }
 0x18e   : > { %v458_v10 = vpop.trf.xlu0 }
 0x192   : > { %v459_v11 = vpop.trf.xlu0 }
 0x193   : > { %1364 = vmatmul.mubr.msk.bf16.gmra.mrb[8].mxu1 %vm473_vm0, %v457_v9 }
 0x194   : > { %560 = vmatprep.mubr.bf16.mxu1 %v2068_v0 }
 0x196   : > { %v460_v12 = vpop.trf.xlu0 }
 0x19a   : > { %v461_v13 = vpop.trf.xlu0 }
 0x19b   : > { %1365 = vmatmul.mubr.msk.bf16.gmra.mrb[12].mxu1 %vm473_vm0, %v458_v10 }
 0x19c   : > { %570 = vmatprep.mubr.bf16.mxu1 %v2068_v0 }
 0x19e   : > { %v462_v14 = vpop.trf.xlu0 }
 0x1a2   : > { %v625_v15 = vpop.trf.xlu0 }
 0x1a3   : > { %1366 = vmatmul.mubr.msk.bf16.gmra.mrb[16].mxu1 %vm473_vm0, %v459_v11  ;;  %1373 = vmatmul.mubr.msk.bf16.vlgmr.msra.gmra.mrb[0].mxu0 %vm473_vm0, %v625_v15 }
 0x1a4   : > { %580 = vmatprep.mubr.bf16.mxu1 %v2068_v0  ;;  %709 = vmatprep.mubr.bf16.mxu0 %v2068_v0 }
 0x1a6   : > { %v626_v16 = vpop.trf.xlu0 }
 0x1aa   : > { %v627_v17 = vpop.trf.xlu0 }
 0x1ab   : > { %1367 = vmatmul.mubr.msk.bf16.gmra.mrb[20].mxu1 %vm473_vm0, %v460_v12  ;;  %1374 = vmatmul.mubr.msk.bf16.gmra.mrb[4].mxu0 %vm473_vm0, %v626_v16 }
 0x1ac   : > { %590 = vmatprep.mubr.bf16.mxu1 %v2068_v0  ;;  %719 = vmatprep.mubr.bf16.mxu0 %v2068_v0 }
 0x1ae   : > { %v628_v18 = vpop.trf.xlu0 }
 0x1b2   : > { %v629_v19 = vpop.trf.xlu0 }
 0x1b3   : > { %1368 = vmatmul.mubr.msk.bf16.gmra.mrb[24].mxu1 %vm473_vm0, %v461_v13  ;;  %1375 = vmatmul.mubr.msk.bf16.gmra.mrb[8].mxu0 %vm473_vm0, %v627_v17 }
 0x1b4   : > { %600 = vmatprep.mubr.bf16.mxu1 %v2068_v0  ;;  %729 = vmatprep.mubr.bf16.mxu0 %v2068_v0 }
 0x1b6   : > { %v630_v20 = vpop.trf.xlu0 }
 0x1ba   : > { %v631_v21 = vpop.trf.xlu0 }
 0x1bb   : > { %1369 = vmatmul.mubr.msk.bf16.gmra.mrb[28].mxu1 %vm473_vm0, %v462_v14  ;;  %1376 = vmatmul.mubr.msk.bf16.gmra.mrb[12].mxu0 %vm473_vm0, %v628_v18 }
 0x1bc   : > { %739 = vmatprep.mubr.bf16.mxu0 %v2068_v0 }
 0x1be   : > { %v632_v22 = vpop.trf.xlu0 }
 0x1c3   : > { %1377 = vmatmul.mubr.msk.bf16.gmra.mrb[16].mxu0 %vm473_vm0, %v629_v19 }
 0x1c4   : > { %749 = vmatprep.mubr.bf16.mxu0 %v2068_v0 }
 0x1cb   : > { %1378 = vmatmul.mubr.msk.bf16.gmra.mrb[20].mxu0 %vm473_vm0, %v630_v20 }
 0x1cc   : > { %759 = vmatprep.mubr.bf16.mxu0 %v2068_v0 }
 0x1d3   : > { %1379 = vmatmul.mubr.msk.bf16.gmra.mrb[24].mxu0 %vm473_vm0, %v631_v21 }
 0x1d4   : > { %769 = vmatprep.mubr.bf16.mxu0 %v2068_v0 }
 0x1db   : > { %1380 = vmatmul.mubr.msk.bf16.gmra.mrb[28].mxu0 %vm473_vm0, %v632_v22 }
 0x256   : > { %v532_v23 = vpop.f32.mrb[0].mxu1 }
 0x257   : > { %v534_v24 = vpop.f32.mrb[1].mxu1 }
 0x258   : > { %v536_v25 = vpop.f32.mrb[2].mxu1 }
 0x259   : > { %v538_v26 = vpop.f32.mrb[3].mxu1 }
 0x25e   : > { %v542_v27 = vpop.f32.mrb[4].mxu1 }
 0x25f   : > { %v544_v28 = vpop.f32.mrb[5].mxu1 }
 0x260   : > { %v546_v29 = vpop.f32.mrb[6].mxu1 }
 0x261   : > { %v548_v30 = vpop.f32.mrb[7].mxu1 }
 0x266   : > { %v552_v31 = vpop.f32.mrb[8].mxu1 }
 0x267   : > { %v554_v32 = vpop.f32.mrb[9].mxu1 }
 0x268   : > { %v556_v33 = vpop.f32.mrb[10].mxu1 }
 0x269   : > { %v558_v34 = vpop.f32.mrb[11].mxu1 }
 0x26e   : > { %v562_v35 = vpop.f32.mrb[12].mxu1 }
 0x26f   : > { %v564_v36 = vpop.f32.mrb[13].mxu1 }
 0x270   : > { %v566_v37 = vpop.f32.mrb[14].mxu1 }
 0x271   : > { %v568_v38 = vpop.f32.mrb[15].mxu1 }
 0x276   : > { %v2550_v39 = vpop.f32.mrb[16].mxu1  ;;  %v701_v40 = vpop.f32.mrb[0].mxu0 }
 0x277   : > { %v2552_v41 = vadd.f32 %v701_v40, %v532_v23  ;;  %v2554_v42 = vpop.f32.mrb[17].mxu1  ;;  %v703_v43 = vpop.f32.mrb[1].mxu0 }
 0x278   : > { %v2556_v44 = vadd.f32 %v703_v43, %v534_v24  ;;  %v2558_v45 = vpop.f32.mrb[18].mxu1  ;;  %v705_v46 = vpop.f32.mrb[2].mxu0 }
 0x279   : > { %v2560_v47 = vadd.f32 %v705_v46, %v536_v25  ;;  %v578_v48 = vpop.f32.mrb[19].mxu1  ;;  %v707_v49 = vpop.f32.mrb[3].mxu0 }
 0x27a   : > { %v2562_v50 = vadd.f32 %v707_v49, %v538_v26  ;;  %v780_v51 = vmax.f32 %v2552_v41, %v2556_v44 }
 0x27c   : > { %781 = vmax.xlane.f32.xlu1 %v780_v51  ;;  %v783_v54 = vmax.f32 %v2560_v47, %v2562_v50 }
 0x27e   : > { %v2566_v52 = vpop.f32.mrb[20].mxu1  ;;  %v711_v53 = vpop.f32.mrb[4].mxu0 }
 0x27f   : > { %v2570_v55 = vadd.f32 %v711_v53, %v542_v27  ;;  %v584_v56 = vpop.f32.mrb[21].mxu1  ;;  %v713_v57 = vpop.f32.mrb[5].mxu0 }
 0x280   : > { %v2572_v58 = vadd.f32 %v713_v57, %v544_v28  ;;  %v586_v59 = vpop.f32.mrb[22].mxu1  ;;  %v715_v60 = vpop.f32.mrb[6].mxu0  ;;  %784 = vmax.xlane.f32.xlu1 %v783_v54 }
 0x281   : > { %v2574_v61 = vadd.f32 %v715_v60, %v546_v29  ;;  %v588_v62 = vpop.f32.mrb[23].mxu1  ;;  %v717_v63 = vpop.f32.mrb[7].mxu0 }
 0x282   : > { %v2576_v0 = vadd.f32 %v717_v63, %v548_v30  ;;  %v786_v1 = vmax.f32 %v2570_v55, %v2572_v58 }
 0x284   : > { %787 = vmax.xlane.f32.xlu1 %v786_v1  ;;  %v789_v4 = vmax.f32 %v2574_v61, %v2576_v0 }
 0x286   : > { %v592_v2 = vpop.f32.mrb[24].mxu1  ;;  %v721_v3 = vpop.f32.mrb[8].mxu0 }
 0x287   : > { %v2582_v5 = vadd.f32 %v721_v3, %v552_v31  ;;  %v594_v6 = vpop.f32.mrb[25].mxu1  ;;  %v723_v7 = vpop.f32.mrb[9].mxu0 }
 0x288   : > { %v2584_v8 = vadd.f32 %v723_v7, %v554_v32  ;;  %v596_v9 = vpop.f32.mrb[26].mxu1  ;;  %v725_v10 = vpop.f32.mrb[10].mxu0  ;;  %790 = vmax.xlane.f32.xlu1 %v789_v4 }
 0x289   : > { %v2586_v11 = vadd.f32 %v725_v10, %v556_v33  ;;  %v598_v12 = vpop.f32.mrb[27].mxu1  ;;  %v727_v13 = vpop.f32.mrb[11].mxu0 }
 0x28a   : > { %v2588_v14 = vadd.f32 %v727_v13, %v558_v34  ;;  %v792_v15 = vmax.f32 %v2582_v5, %v2584_v8 }
 0x28c   : > { %793 = vmax.xlane.f32.xlu1 %v792_v15  ;;  %v795_v18 = vmax.f32 %v2586_v11, %v2588_v14 }
 0x28e   : > { %v602_v16 = vpop.f32.mrb[28].mxu1  ;;  %v731_v17 = vpop.f32.mrb[12].mxu0 }
 0x28f   : > { %v2594_v19 = vadd.f32 %v731_v17, %v562_v35  ;;  %v604_v20 = vpop.f32.mrb[29].mxu1  ;;  %v733_v21 = vpop.f32.mrb[13].mxu0 }
 0x290   : > { %v2596_v22 = vadd.f32 %v733_v21, %v564_v36  ;;  %v606_v23 = vpop.f32.mrb[30].mxu1  ;;  %v735_v24 = vpop.f32.mrb[14].mxu0  ;;  %796 = vmax.xlane.f32.xlu1 %v795_v18 }
 0x291   : > { %v2598_v25 = vadd.f32 %v735_v24, %v566_v37  ;;  %v608_v26 = vpop.f32.mrb[31].mxu1  ;;  %v737_v27 = vpop.f32.mrb[15].mxu0 }
 0x292   : > { %v2600_v28 = vadd.f32 %v737_v27, %v568_v38  ;;  %v798_v29 = vmax.f32 %v2594_v19, %v2596_v22 }
 0x294   : > { %799 = vmax.xlane.f32.xlu1 %v798_v29  ;;  %v801_v31 = vmax.f32 %v2598_v25, %v2600_v28 }
 0x296   : > { %v741_v30 = vpop.f32.mrb[16].mxu0 }
 0x297   : > { %v2607_v32 = vadd.f32 %v741_v30, %v2550_v39  ;;  %v743_v33 = vpop.f32.mrb[17].mxu0 }
 0x298   : > { %v2610_v34 = vadd.f32 %v743_v33, %v2554_v42  ;;  %v745_v35 = vpop.f32.mrb[18].mxu0  ;;  %802 = vmax.xlane.f32.xlu1 %v801_v31 }
 0x299   : > { %v2613_v36 = vadd.f32 %v745_v35, %v2558_v45  ;;  %v747_v37 = vpop.f32.mrb[19].mxu0 }
 0x29a   : > { %v2615_v38 = vadd.f32 %v747_v37, %v578_v48  ;;  %v804_v40 = vmax.f32 %v2607_v32, %v2610_v34 }
 0x29c   : > { %805 = vmax.xlane.f32.xlu1 %v804_v40  ;;  %v807_v39 = vmax.f32 %v2613_v36, %v2615_v38 }
 0x29e   : > { %v751_v43 = vpop.f32.mrb[20].mxu0  ;;  %808 = vmax.xlane.f32.xlu0 %v807_v39 }
 0x29f   : > { %v2622_v42 = vadd.f32 %v751_v43, %v2566_v52  ;;  %v753_v46 = vpop.f32.mrb[21].mxu0 }
 0x2a0   : > { %v2624_v49 = vadd.f32 %v753_v46, %v584_v56  ;;  %v755_v45 = vpop.f32.mrb[22].mxu0 }
 0x2a1   : > { %v2626_v51 = vadd.f32 %v755_v45, %v586_v59  ;;  %v757_v48 = vpop.f32.mrb[23].mxu0 }
 0x2a2   : > { %v2628_v53 = vadd.f32 %v757_v48, %v588_v62  ;;  %v810_v54 = vmax.f32 %v2622_v42, %v2624_v49 }
 0x2a4   : > { %811 = vmax.xlane.f32.xlu1 %v810_v54  ;;  %v813_v60 = vmax.f32 %v2626_v51, %v2628_v53 }
 0x2a6   : > { %v761_v57 = vpop.f32.mrb[24].mxu0 }
 0x2a7   : > { %v2634_v63 = vadd.f32 %v761_v57, %v592_v2  ;;  %v763_v52 = vpop.f32.mrb[25].mxu0 }
 0x2a8   : > { %v2636_v1 = vadd.f32 %v763_v52, %v594_v6  ;;  %v765_v56 = vpop.f32.mrb[26].mxu0  ;;  %814 = vmax.xlane.f32.xlu1 %v813_v60 }
 0x2a9   : > { %v2638_v59 = vadd.f32 %v765_v56, %v596_v9  ;;  %v767_v3 = vpop.f32.mrb[27].mxu0 }
 0x2aa   : > { %v2640_v62 = vadd.f32 %v767_v3, %v598_v12  ;;  %v816_v4 = vmax.f32 %v2634_v63, %v2636_v1 }
 0x2ac   : > { %817 = vmax.xlane.f32.xlu1 %v816_v4  ;;  %v819_v10 = vmax.f32 %v2638_v59, %v2640_v62 }
 0x2ae   : > { %v771_v7 = vpop.f32.mrb[28].mxu0 }
 0x2af   : > { %v2646_v2 = vadd.f32 %v771_v7, %v602_v16  ;;  %v773_v13 = vpop.f32.mrb[29].mxu0 }
 0x2b0   : > { %v2648_v6 = vadd.f32 %v773_v13, %v604_v20  ;;  %v775_v15 = vpop.f32.mrb[30].mxu0  ;;  %820 = vmax.xlane.f32.xlu1 %v819_v10 }
 0x2b1   : > { %v2650_v9 = vadd.f32 %v775_v15, %v606_v23  ;;  %v777_v17 = vpop.f32.mrb[31].mxu0 }
 0x2b2   : > { %v2652_v12 = vadd.f32 %v777_v17, %v608_v26  ;;  %v822_v18 = vmax.f32 %v2646_v2, %v2648_v6 }
 0x2b4   : > { %823 = vmax.xlane.f32.xlu1 %v822_v18  ;;  %v825_v21 = vmax.f32 %v2650_v9, %v2652_v12 }
 0x2b8   : > { %826 = vmax.xlane.f32.xlu1 %v825_v21 }
 0x309   : > { %v782_v16 = vpop.xlane.xlu1 %781 }
 0x30a   : > { %v828_v24 = vsub.f32 %v2552_v41, %v782_v16  ;;  %v829_v20 = vsub.f32 %v2556_v44, %v782_v16 }
 0x30c   : > { %v860_v27 = vmul.f32 1.442695, %v828_v24  ;;  %v862_v29 = vmul.f32 1.442695, %v829_v20 }
 0x30d   : > { %v785_v23 = vpop.xlane.xlu1 %784 }
 0x30e   : > { %1613 = vpow2.f32 %v860_v27  ;;  %v830_v26 = vsub.f32 %v2560_v47, %v785_v23  ;;  %v831_v30 = vsub.f32 %v2562_v50, %v785_v23 }
 0x30f   : > { %1615 = vpow2.f32 %v862_v29 }
 0x310   : > { %v864_v31 = vmul.f32 1.442695, %v830_v26  ;;  %v866_v33 = vmul.f32 1.442695, %v831_v30 }
 0x311   : > { %v788_v35 = vpop.xlane.xlu1 %787 }
 0x312   : > { %1617 = vpow2.f32 %v864_v31  ;;  %v832_v37 = vsub.f32 %v2570_v55, %v788_v35  ;;  %v833_v40 = vsub.f32 %v2572_v58, %v788_v35 }
 0x313   : > { %1619 = vpow2.f32 %v866_v33 }
 0x314   : > { %v868_v41 = vmul.f32 1.442695, %v832_v37  ;;  %v870_v44 = vmul.f32 1.442695, %v833_v40 }
 0x315   : > { %v791_v39 = vpop.xlane.xlu1 %790 }
 0x316   : > { %1621 = vpow2.f32 %v868_v41  ;;  %v834_v43 = vsub.f32 %v2574_v61, %v791_v39  ;;  %v835_v47 = vsub.f32 %v2576_v0, %v791_v39 }
 0x317   : > { %1623 = vpow2.f32 %v870_v44 }
 0x318   : > { %v2666_v50 = vpop.eup %1613  ;;  %v872_v46 = vmul.f32 1.442695, %v834_v43  ;;  %v874_v45 = vmul.f32 1.442695, %v835_v47 }
 0x319   : > { %v2668_v48 = vpop.eup %1615  ;;  %v794_v54 = vpop.xlane.xlu1 %793 }
 0x31a   : > { %1625 = vpow2.f32 %v872_v46  ;;  %v836_v55 = vsub.f32 %v2582_v5, %v794_v54  ;;  %v837_v58 = vsub.f32 %v2584_v8, %v794_v54  ;;  %v924_v57 = vadd.f32 %v2668_v48, %v2666_v50 }
 0x31b   : > { %1627 = vpow2.f32 %v874_v45 }
 0x31c   : > { %v2674_v61 = vpop.eup %1617  ;;  %v876_v0 = vmul.f32 1.442695, %v836_v55  ;;  %v878_v60 = vmul.f32 1.442695, %v837_v58  ;;  %925 = vadd.xlane.f32.xlu1 %v924_v57 }
 0x31d   : > { %v2676_v52 = vpop.eup %1619  ;;  %v797_v56 = vpop.xlane.xlu1 %796 }
 0x31e   : > { %1629 = vpow2.f32 %v876_v0  ;;  %v838_v3 = vsub.f32 %v2586_v11, %v797_v56  ;;  %v839_v4 = vsub.f32 %v2588_v14, %v797_v56  ;;  %v927_v5 = vadd.f32 %v2676_v52, %v2674_v61 }
 0x31f   : > { %1631 = vpow2.f32 %v878_v60 }
 0x320   : > { %v2682_v8 = vpop.eup %1621  ;;  %v880_v7 = vmul.f32 1.442695, %v838_v3  ;;  %v882_v10 = vmul.f32 1.442695, %v839_v4  ;;  %928 = vadd.xlane.f32.xlu1 %v927_v5 }
 0x321   : > { %v2684_v13 = vpop.eup %1623  ;;  %v800_v15 = vpop.xlane.xlu1 %799 }
 0x322   : > { %1633 = vpow2.f32 %v880_v7  ;;  %v840_v17 = vsub.f32 %v2594_v19, %v800_v15  ;;  %v841_v18 = vsub.f32 %v2596_v22, %v800_v15  ;;  %v930_v11 = vadd.f32 %v2684_v13, %v2682_v8 }
 0x323   : > { %1635 = vpow2.f32 %v882_v10 }
 0x324   : > { %v2690_v14 = vpop.eup %1625  ;;  %v884_v21 = vmul.f32 1.442695, %v840_v17  ;;  %v886_v16 = vmul.f32 1.442695, %v841_v18  ;;  %931 = vadd.xlane.f32.xlu1 %v930_v11 }
 0x325   : > { %v2692_v24 = vpop.eup %1627  ;;  %v803_v20 = vpop.xlane.xlu1 %802 }
 0x326   : > { %1637 = vpow2.f32 %v884_v21  ;;  %v842_v27 = vsub.f32 %v2598_v25, %v803_v20  ;;  %v843_v29 = vsub.f32 %v2600_v28, %v803_v20  ;;  %v933_v19 = vadd.f32 %v2692_v24, %v2690_v14 }
 0x327   : > { %1639 = vpow2.f32 %v886_v16 }
 0x328   : > { %v2698_v22 = vpop.eup %1629  ;;  %v888_v23 = vmul.f32 1.442695, %v842_v27  ;;  %v890_v26 = vmul.f32 1.442695, %v843_v29  ;;  %934 = vadd.xlane.f32.xlu1 %v933_v19 }
 0x329   : > { %v2700_v30 = vpop.eup %1631  ;;  %v806_v31 = vpop.xlane.xlu1 %805 }
 0x32a   : > { %1641 = vpow2.f32 %v888_v23  ;;  %v844_v33 = vsub.f32 %v2607_v32, %v806_v31  ;;  %v845_v35 = vsub.f32 %v2610_v34, %v806_v31  ;;  %v936_v25 = vadd.f32 %v2700_v30, %v2698_v22 }
 0x32b   : > { %1643 = vpow2.f32 %v890_v26  ;;  %v809_v28 = vpop.xlane.xlu0 %808 }
 0x32c   : > { %v2706_v37 = vpop.eup %1633  ;;  %v892_v40 = vmul.f32 1.442695, %v844_v33  ;;  %v894_v41 = vmul.f32 1.442695, %v845_v35  ;;  %v846_v44 = vsub.f32 %v2613_v36, %v809_v28  ;;  %v847_v39 = vsub.f32 %v2615_v38, %v809_v28  ;;  %937 = vadd.xlane.f32.xlu0 %v936_v25 }
 0x32d   : > { %v2710_v43 = vpop.eup %1635 }
 0x32e   : > { %1645 = vpow2.f32 %v892_v40  ;;  %v896_v32 = vmul.f32 1.442695, %v846_v44  ;;  %v898_v47 = vmul.f32 1.442695, %v847_v39  ;;  %v939_v34 = vadd.f32 %v2710_v43, %v2706_v37 }
 0x32f   : > { %1647 = vpow2.f32 %v894_v41 }
 0x330   : > { %v2714_v46 = vpop.eup %1637  ;;  %1649 = vpow2.f32 %v896_v32  ;;  %940 = vadd.xlane.f32.xlu1 %v939_v34 }
 0x331   : > { %v2716_v45 = vpop.eup %1639  ;;  %1651 = vpow2.f32 %v898_v47  ;;  %v812_v36 = vpop.xlane.xlu1 %811 }
 0x332   : > { %v848_v38 = vsub.f32 %v2622_v42, %v812_v36  ;;  %v849_v54 = vsub.f32 %v2624_v49, %v812_v36  ;;  %v942_v55 = vadd.f32 %v2716_v45, %v2714_v46 }
 0x334   : > { %v2722_v58 = vpop.eup %1641  ;;  %v900_v57 = vmul.f32 1.442695, %v848_v38  ;;  %v902_v0 = vmul.f32 1.442695, %v849_v54  ;;  %943 = vadd.xlane.f32.xlu0 %v942_v55 }
 0x335   : > { %v2724_v60 = vpop.eup %1643  ;;  %v815_v56 = vpop.xlane.xlu1 %814 }
 0x336   : > { %1653 = vpow2.f32 %v900_v57  ;;  %v850_v3 = vsub.f32 %v2626_v51, %v815_v56  ;;  %v851_v4 = vsub.f32 %v2628_v53, %v815_v56  ;;  %v945_v42 = vadd.f32 %v2724_v60, %v2722_v58 }
 0x337   : > { %1655 = vpow2.f32 %v902_v0 }
 0x338   : > { %v2730_v49 = vpop.eup %1645  ;;  %v904_v5 = vmul.f32 1.442695, %v850_v3  ;;  %v906_v7 = vmul.f32 1.442695, %v851_v4  ;;  %946 = vadd.xlane.f32.xlu1 %v945_v42  ;;  %v1612_v4 = vld [vmem:[%s2495_s6 + $0x24] ss:$8 sps:$4 sm:$0xff]  }
 0x339   : > { %v2732_v10 = vpop.eup %1647  ;;  %v818_v15 = vpop.xlane.xlu1 %817  ;;  %1078 = vmatprep.mubr.bf16.mxu0 %v1612_v4 }
 0x33a   : > { %v2734_v17 = vpop.eup %1649  ;;  %1657 = vpow2.f32 %v904_v5  ;;  %v852_v18 = vsub.f32 %v2634_v63, %v818_v15  ;;  %v853_v51 = vsub.f32 %v2636_v1, %v818_v15  ;;  %v948_v53 = vadd.f32 %v2732_v10, %v2730_v49 }
 0x33b   : > { %v2740_v11 = vpop.eup %1651  ;;  %1659 = vpow2.f32 %v906_v7 }
 0x33c   : > { %v908_v21 = vmul.f32 1.442695, %v852_v18  ;;  %v910_v16 = vmul.f32 1.442695, %v853_v51  ;;  %949 = vadd.xlane.f32.xlu0 %v948_v53  ;;  %v951_v20 = vadd.f32 %v2740_v11, %v2734_v17 }
 0x33d   : > { %v821_v27 = vpop.xlane.xlu1 %820 }
 0x33e   : > { %1661 = vpow2.f32 %v908_v21  ;;  %952 = vadd.xlane.f32.xlu1 %v951_v20  ;;  %v854_v29 = vsub.f32 %v2638_v59, %v821_v27  ;;  %v855_v63 = vsub.f32 %v2640_v62, %v821_v27 }
 0x33f   : > { %1663 = vpow2.f32 %v910_v16 }
 0x340   : > { %v2746_v1 = vpop.eup %1653  ;;  %v912_v19 = vmul.f32 1.442695, %v854_v29  ;;  %v914_v23 = vmul.f32 1.442695, %v855_v63 }
 0x341   : > { %v2748_v26 = vpop.eup %1655  ;;  %v824_v31 = vpop.xlane.xlu1 %823 }
 0x342   : > { %1665 = vpow2.f32 %v912_v19  ;;  %v856_v33 = vsub.f32 %v2646_v2, %v824_v31  ;;  %v857_v35 = vsub.f32 %v2648_v6, %v824_v31  ;;  %v954_v25 = vadd.f32 %v2748_v26, %v2746_v1 }
 0x343   : > { %1667 = vpow2.f32 %v914_v23 }
 0x344   : > { %v2754_v59 = vpop.eup %1657  ;;  %v916_v62 = vmul.f32 1.442695, %v856_v33  ;;  %v918_v28 = vmul.f32 1.442695, %v857_v35  ;;  %955 = vadd.xlane.f32.xlu0 %v954_v25 }
 0x345   : > { %v2756_v40 = vpop.eup %1659  ;;  %v827_v41 = vpop.xlane.xlu1 %826 }
 0x346   : > { %1669 = vpow2.f32 %v916_v62  ;;  %v858_v44 = vsub.f32 %v2650_v9, %v827_v41  ;;  %v859_v39 = vsub.f32 %v2652_v12, %v827_v41  ;;  %v957_v2 = vadd.f32 %v2756_v40, %v2754_v59 }
 0x347   : > { %1671 = vpow2.f32 %v918_v28 }
 0x348   : > { %v2762_v6 = vpop.eup %1661  ;;  %v920_v32 = vmul.f32 1.442695, %v858_v44  ;;  %v922_v47 = vmul.f32 1.442695, %v859_v39  ;;  %958 = vadd.xlane.f32.xlu1 %v957_v2 }
 0x349   : > { %v2764_v34 = vpop.eup %1663 }
 0x34a   : > { %1673 = vpow2.f32 %v920_v32  ;;  %v960_v36 = vadd.f32 %v2764_v34, %v2762_v6 }
 0x34b   : > { %1675 = vpow2.f32 %v922_v47 }
 0x34c   : > { %v2768_v9 = vpop.eup %1665  ;;  %961 = vadd.xlane.f32.xlu0 %v960_v36 }
 0x34d   : > { %v2770_v12 = vpop.eup %1667 }
 0x34e   : > { %v963_v38 = vadd.f32 %v2770_v12, %v2768_v9 }
 0x350   : > { %v2774_v54 = vpop.eup %1669  ;;  %964 = vadd.xlane.f32.xlu1 %v963_v38 }
 0x351   : > { %v2776_v55 = vpop.eup %1671 }
 0x352   : > { %v966_v57 = vadd.f32 %v2776_v55, %v2774_v54 }
 0x354   : > { %v2780_v0 = vpop.eup %1673  ;;  %967 = vadd.xlane.f32.xlu0 %v966_v57 }
 0x355   : > { %v2782_v56 = vpop.eup %1675 }
 0x356   : > { %v969_v3 = vadd.f32 %v2782_v56, %v2780_v0 }
 0x358   : > { %970 = vadd.xlane.f32.xlu1 %v969_v3 }
 0x3a9   : > { %v926_v42 = vpop.xlane.xlu1 %925 }
 0x3aa   : > { %1677 = vrcp.f32 %v926_v42 }
 0x3ad   : > { %v929_v5 = vpop.xlane.xlu1 %928 }
 0x3ae   : > { %1679 = vrcp.f32 %v929_v5 }
 0x3b1   : > { %v932_v7 = vpop.xlane.xlu1 %931 }
 0x3b2   : > { %1681 = vrcp.f32 %v932_v7 }
 0x3b4   : > { %v1678_v18 = vpop.eup %1677 }
 0x3b5   : > { %v935_v15 = vpop.xlane.xlu1 %934  ;;  %v989_v21 = vmul.f32 %v1678_v18, %v2668_v48  ;;  %v988_v20 = vmul.f32 %v1678_v18, %v2666_v50 }
 0x3b6   : > { %1683 = vrcp.f32 %v935_v15 }
 0x3b8   : > { %v1680_v51 = vpop.eup %1679 }
 0x3b9   : > { %v938_v53 = vpop.xlane.xlu0 %937  ;;  %v991_v16 = vmul.f32 %v1680_v51, %v2676_v52  ;;  %v990_v27 = vmul.f32 %v1680_v51, %v2674_v61 }
 0x3ba   : > { %1685 = vrcp.f32 %v938_v53 }
 0x3bb   : > { %v1021_v29 = vpack.c.bf16 %v991_v16, %v989_v21  ;;  %v1020_v63 = vpack.c.bf16 %v990_v27, %v988_v20 }
 0x3bc   : > { %v1682_v23 = vpop.eup %1681 }
 0x3bd   : > { %1046 = vmatprep.subr.bf16.mxu0 %v1021_v29  ;;  %v941_v19 = vpop.xlane.xlu1 %940  ;;  %v993_v35 = vmul.f32 %v1682_v23, %v2684_v13  ;;  %v992_v52 = vmul.f32 %v1682_v23, %v2682_v8 }
 0x3be   : > { %1687 = vrcp.f32 %v941_v19  ;;  %1047 = vmatpush1.bf16.xpose.msra.mxu0 %v1020_v63 }
 0x3c0   : > { %v1684_v31 = vpop.eup %1683 }
 0x3c1   : > { %v944_v33 = vpop.xlane.xlu0 %943  ;;  %v995_v48 = vmul.f32 %v1684_v31, %v2692_v24  ;;  %v994_v50 = vmul.f32 %v1684_v31, %v2690_v14 }
 0x3c2   : > { %1689 = vrcp.f32 %v944_v33 }
 0x3c3   : > { %v1023_v25 = vpack.c.bf16 %v995_v48, %v993_v35  ;;  %v1022_v61 = vpack.c.bf16 %v994_v50, %v992_v52 }
 0x3c4   : > { %v1686_v28 = vpop.eup %1685 }
 0x3c5   : > { %1048 = vmatprep.subr.bf16.mxu0 %v1023_v25  ;;  %v947_v62 = vpop.xlane.xlu1 %946  ;;  %v997_v39 = vmul.f32 %v1686_v28, %v2700_v30  ;;  %v996_v24 = vmul.f32 %v1686_v28, %v2698_v22 }
 0x3c6   : > { %1691 = vrcp.f32 %v947_v62  ;;  %1049 = vmatpush1.bf16.xpose.msra.mxu0 %v1022_v61  ;;  %v1089_v61 = vld [vmem:[#allocation11] sm:$0xff] }
 0x3c7   : > { %1092 = vperm.xlu0 %1601, %v1089_v61  }
 0x3c8   : > { %v1688_v41 = vpop.eup %1687 }
 0x3c9   : > { %v950_v44 = vpop.xlane.xlu0 %949  ;;  %v999_v13 = vmul.f32 %v1688_v41, %v2710_v43  ;;  %v998_v8 = vmul.f32 %v1688_v41, %v2706_v37 }
 0x3ca   : > { %1693 = vrcp.f32 %v950_v44 }
 0x3cb   : > { %v953_v14 = vpop.xlane.xlu1 %952  ;;  %v1025_v2 = vpack.c.bf16 %v999_v13, %v997_v39  ;;  %v1024_v32 = vpack.c.bf16 %v998_v8, %v996_v24 }
 0x3cc   : > { %1695 = vrcp.f32 %v953_v14  ;;  %v1690_v47 = vpop.eup %1689 }
 0x3cd   : > { %1050 = vmatprep.subr.bf16.mxu0 %v1025_v2  ;;  %v1001_v57 = vmul.f32 %v1690_v47, %v2716_v45  ;;  %v1000_v43 = vmul.f32 %v1690_v47, %v2714_v46 }
 0x3ce   : > { %1051 = vmatpush1.bf16.xpose.msra.mxu0 %v1024_v32 }
 0x3d0   : > { %v1692_v36 = vpop.eup %1691 }
 0x3d1   : > { %v956_v38 = vpop.xlane.xlu0 %955  ;;  %v1003_v30 = vmul.f32 %v1692_v36, %v2724_v60  ;;  %v1002_v22 = vmul.f32 %v1692_v36, %v2722_v58 }
 0x3d2   : > { %1697 = vrcp.f32 %v956_v38  ;;  %v1144_v38 = vld [vmem:[%s378_s16] sm:$0xff] }
 0x3d3   : > { %v1027_v3 = vpack.c.bf16 %v1003_v30, %v1001_v57  ;;  %v1026_v37 = vpack.c.bf16 %v1002_v22, %v1000_v43 }
 0x3d4   : > { %v1694_v4 = vpop.eup %1693 }
 0x3d5   : > { %1052 = vmatprep.subr.bf16.mxu0 %v1027_v3  ;;  %v959_v42 = vpop.xlane.xlu1 %958  ;;  %v1005_v7 = vmul.f32 %v1694_v4, %v2732_v10  ;;  %v1004_v46 = vmul.f32 %v1694_v4, %v2730_v49 }
 0x3d6   : > { %v1696_v5 = vpop.eup %1695  ;;  %1699 = vrcp.f32 %v959_v42  ;;  %1053 = vmatpush1.bf16.xpose.msra.mxu0 %v1026_v37 }
 0x3d7   : > { %v1007_v15 = vmul.f32 %v1696_v5, %v2740_v11  ;;  %v1006_v45 = vmul.f32 %v1696_v5, %v2734_v17 }
 0x3d9   : > { %v962_v60 = vpop.xlane.xlu0 %961  ;;  %v1029_v18 = vpack.c.bf16 %v1007_v15, %v1005_v7  ;;  %v1028_v58 = vpack.c.bf16 %v1006_v45, %v1004_v46 }
 0x3da   : > { %1701 = vrcp.f32 %v962_v60 }
 0x3db   : > { %1054 = vmatprep.subr.bf16.mxu0 %v1029_v18 }
 0x3dc   : > { %v1698_v53 = vpop.eup %1697 }
 0x3dd   : > { %v965_v51 = vpop.xlane.xlu1 %964  ;;  %v1009_v20 = vmul.f32 %v1698_v53, %v2748_v26  ;;  %v1008_v11 = vmul.f32 %v1698_v53, %v2746_v1 }
 0x3de   : > { %1703 = vrcp.f32 %v965_v51  ;;  %1055 = vmatpush1.bf16.xpose.msra.mxu0 %v1028_v58 }
 0x3e0   : > { %v1700_v21 = vpop.eup %1699 }
 0x3e1   : > { %v968_v16 = vpop.xlane.xlu0 %967  ;;  %v1011_v10 = vmul.f32 %v1700_v21, %v2756_v40  ;;  %v1010_v17 = vmul.f32 %v1700_v21, %v2754_v59 }
 0x3e2   : > { %1705 = vrcp.f32 %v968_v16 }
 0x3e3   : > { %v1031_v27 = vpack.c.bf16 %v1011_v10, %v1009_v20  ;;  %v1030_v29 = vpack.c.bf16 %v1010_v17, %v1008_v11 }
 0x3e4   : > { %v1702_v63 = vpop.eup %1701 }
 0x3e5   : > { %1056 = vmatprep.subr.bf16.mxu0 %v1031_v27  ;;  %v971_v49 = vpop.xlane.xlu1 %970  ;;  %v1013_v23 = vmul.f32 %v1702_v63, %v2764_v34  ;;  %v1012_v26 = vmul.f32 %v1702_v63, %v2762_v6  ;;  %v1610_v6 = vld [vmem:[%s2495_s6 + $0x20] ss:$8 sps:$4 sm:$0xff]   ;;  %s1163_s6 = sshll.u32 %s429_s3, 4  ;;  %s2831_s6 = int_to_ptr.vmem [resolvable:$true] %s1163_s6 }
 0x3e6   : > { %1707 = vrcp.f32 %v971_v49  ;;  %1057 = vmatpush1.bf16.xpose.msra.mxu0 %v1030_v29  ;;  %s1890_s18 = scalar_lea.vmem %s2831_s6, 128  ;;  %p1897_p11 = scmp.lt.s32.totalorder %s2831_s6, %s1895_s13 }
 0x3e7   : > { %p1891_p0 = scmp.ne.s32.totalorder %s2831_s6, %s1890_s18  ;;  %p1898_p2 = scmp.lt.s32.totalorder %s1896_s0, %s1890_s18 }
 0x3e8   : > { %v1704_v19 = vpop.eup %1703 }
 0x3e9   : > { %v1015_v31 = vmul.f32 %v1704_v19, %v2770_v12  ;;  %v1014_v1 = vmul.f32 %v1704_v19, %v2768_v9  ;;  %v2069_v9 = vmov 0.0   ;;  %p1892_p10 = pnand %p1891_p0, %p3013_p12  ;;  %p1899_p5 = por %p1898_p2, %p1897_p11 }
 0x3ea   : > { %1392 = vmatprep.subr.bf16.mxu1 %v2069_v9  ;;  %1394 = vmatprep.mubr.msk.bf16.mxu1 %vm2070_vm1, %v2069_v9 }
 0x3eb   : > { %v1033_v40 = vpack.c.bf16 %v1015_v31, %v1013_v23  ;;  %v1032_v59 = vpack.c.bf16 %v1014_v1, %v1012_v26  ;;  %p1893_p8 = pneg %p1892_p10 }
 0x3ec   : > { %v1706_v33 = vpop.eup %1705 }
 0x3ed   : > { %1058 = vmatprep.subr.bf16.mxu0 %v1033_v40  ;;  %v1017_v48 = vmul.f32 %v1706_v33, %v2776_v55  ;;  %v1016_v50 = vmul.f32 %v1706_v33, %v2774_v54  ;;  %v1087_v54 = vld [vmem:[#allocation10] sm:$0xf]  ;;  %p1900_p3 = pnand %p1899_p5, %p1893_p8 }
 0x3ee   : > { %1059 = vmatpush1.bf16.xpose.msra.mxu0 %v1032_v59 }
 0x3f0   : > { %v1708_v35 = vpop.eup %1707 }
 0x3f1   : > { %v1019_v52 = vmul.f32 %v1708_v35, %v2782_v56  ;;  %v1018_v34 = vmul.f32 %v1708_v35, %v2780_v0 }
 0x3f3   : > { %v1035_v12 = vpack.c.bf16 %v1019_v52, %v1017_v48  ;;  %v1034_v25 = vpack.c.bf16 %v1018_v34, %v1016_v50 }
 0x3f5   : > { %1060 = vmatprep.subr.bf16.mxu0 %v1035_v12 }
 0x3f6   : > { %1061 = vmatpush1.bf16.xpose.msra.mxu0 %v1034_v25 }
 0x3fd   : > { %1079 = vmatmul.mubr.bf16.vlgmr.msra.gmra.mrb[32].mxu0 %v1610_v6 }
 0x446   : > { %v1093_v0 = vpop.permute.xlu0 %1092 }
 0x4d0   : > { %v1080_v62 = vpop.f32.mrb[32].mxu0 }
 0x4d1   : > { %v1082_v55 = vpop.f32.mrb[33].mxu0 }
 0x4d2   : > { %v1083_v28 = vpop.f32.mrb[34].mxu0 }
 0x4d3   : > { %v1088_v56 = vpack.c.bf16 %v1083_v28, %v1080_v62  ;;  %v1085_v41 = vpop.f32.mrb[35].mxu0 }
 0x4d5   : > { %1393 = vmatpush3.bf16.msra.mxu1 %v1088_v56 }
 0x4d8   : > { %1395 = vmatmul.mubr.msk.bf16.vlgmr.msra.gmra.mrb[32].mxu1 %vm473_vm0, %v1087_v54 }
 0x5ab   : > { %v1132_v44 = vpop.f32.mrb[32].mxu1 }
 0x5ac   : > { %v1133_v39 = vadd.f32 %v1132_v44, %v1093_v0  ;;  %v1396_v13 = vpop.f32.mrb[33].mxu1 }
 0x5ad   : > { %v1135_v24 = vpop.f32.mrb[34].mxu1 }
 0x5ae   : > { %v1138_v8 = vsub.f32 0.0, %v1133_v39  ;;  %v1397_v14 = vpop.f32.mrb[35].mxu1 }
 0x5b0   : > { %v1139_v2 = vmul.f32 1.442695, %v1138_v8 }
 0x5b2   : > { %1709 = vpow2.f32 %v1139_v2 }
 0x5bc   : > { %v1710_v32 = vpop.eup %1709 }
 0x5bd   : > { %v1141_v47 = vadd.f32 1.0, %v1710_v32 }
 0x5bf   : > { %1711 = vrcp.f32 %v1141_v47 }
 0x5c9   : > { %v1712_v36 = vpop.eup %1711 }
 0x5ca   : > { %v1143_v57 = vmul.f32 %v1712_v36, %v1133_v39 }
 0x5cc   : > { %v1145_v30 = vadd.f32 %v1144_v38, %v1143_v57 }
 0x5ce   : > { %1146 = vst [vmem:[%s429_s3] sm:$0xff] %v1145_v30 }
 0x5cf   : > { %1903 = shalt.err (!%p1900_p3)
}
 0x5d0   : > { %s1904_s24 = scalar_lea.hbm %s2829_s19, 128  ;;  %s1908_s11 = scalar_lea.hbm %s3012_s2, 512 }
 0x5d1   : > { %p1905_p13 = scmp.ne.s32.totalorder %s2829_s19, %s1904_s24  ;;  %p1909_p4 = scmp.lt.u32.totalorder %s2829_s19, %s3012_s2 }
 0x5d2   : > { %p1910_p1 = scmp.lt.u32.totalorder %s1908_s11, %s1904_s24  ;;  %p1912_p0 = scmp.lt.u32.totalorder %s1904_s24, %s2829_s19 }
 0x5d3   : > { %p1906_p7 = pnand %p1905_p13, %p3013_p12 }
 0x5d4   : > { %p1911_p9 = por %p1910_p1, %p1909_p4 }
 0x5d5   : > { %p1907_p6 = pneg %p1906_p7 }
 0x5d6   : > { %p1913_p10 = por %p1912_p0, %p1911_p9 }
 0x5d8   : > { %p1914_p8 = pnand %p1913_p10, %p1907_p6 }
 0x5da   : > { %1917 = shalt.err (!%p1914_p8)
}
 0x5db   : > { %1448 = dma.vmem_to_hbm [thread:$0]  (%p3013_p12), %s2831_s6, 128, %s2829_s19, %s1148_s4  }
 0x5dc PF: > { %s3014_s30 = sld [smem:[#allocation21_spill]]  ;;  %s3015_s20 = sld [smem:[#allocation28_spill]] }
 0x5dd   : > { %p1479_p11 = scmp.ge.s32.totalorder %s2056_s10, 2 }
 0x5e2   : > { %s1175_s3 = sand.u32 1, %s3014_s30   ;;  %p3016_p2 = scmp.ne.s32.totalorder %s3015_s20, 0 }
 0x5e3   : > { %s1176_s7 = scalar_lea.sflag [#allocation4], %s1175_s3 }
 0x5e4   : > { %p1471_p5 = pnand %p1479_p11, %p3016_p2 }
 0x5e6   : > { %1999 = dma.done.wait (!%p1471_p5), %s1176_s7, 128  }
 0x5e7   : > { %2001 = vsyncadd (!%p1471_p5), %s1176_s7, 4294967168  ;;  %s29_s10 = sadd.s32 1, %s2056_s10   ;;  %s3018_s24 = sld [smem:[#allocation22_spill]] }
 0x5e8   : > { %p2861_p3 = scmp.ge.s32.totalorder %s29_s10, 6   ;;  %s3019_s25 = sld [smem:[#allocation23_spill]] }
 0x5e9   : > { %s3020_s26 = sld [smem:[#allocation33_spill]]  ;;  %s3021_s6 = sld [smem:[#allocation30_spill]] }
 0x5ea   : > { %s3022_s19 = sld [smem:[#allocation32_spill]]  ;;  %s3023_s21 = smov %s2008_s22 }
 0x5eb   : > { %s3024_s22 = smov %s2012_s23  ;;  %s3025_s23 = smov %s2417_s27 }
 0x5ec   : > { %s3026_s27 = smov %s2032_s28  ;;  %s3027_s28 = smov %s2036_s29 }
 0x5ed   : > { %s3028_s29 = smov %s2355_s14  ;;  %s3029_s30 = smov %s2048_s8 }
 0x5ee   : > { %s3030_s7 = smov %s2052_s9  ;;  %28 = sbr.rel (!%p2861_p3) target bundleno = 23 (0x17), region = 134 }
 0x5ef   : > { %s3031_s8 = smov %s3021_s6 }
 0x5f0   : > { %s3032_s9 = smov %s3022_s19 }
 0x5f5   :  { %1181 = vsyncpa [#allocation3], 1 }
 0x5f6   :  { %1183 = vsyncpa [#allocation3 + $0x1], 1 }
 0x5f7   :  { %1184 = vsyncpa [#allocation6], 1 }
 0x5f8   :  { %1186 = vsyncpa [#allocation6 + $0x1], 1 }
 0x5f9   :  { %1187 = vsyncpa [#allocation9], 1 }
 0x5fa   :  { %1189 = vsyncpa [#allocation9 + $0x1], 1 }
 0x5fb   :  { %1190 = vsyncpa [#allocation12], 1 }
 0x5fc   :  { %1191 = vsyncpa [#allocation4], 1 }
 0x5fd   :  { %1193 = vsyncpa [#allocation4 + $0x1], 1 }

</bundles_post_ra>
